<compile_context>
chip_gen: v7x
topology: tpu7x:2x2x1
jax: 0.10.0
libtpu: 0.0.40
codegen_flags: <defaults>
</compile_context>

<pallas_src>
import functools

import jax
import jax.numpy as jnp
import numpy as np
from jax.experimental import pallas as pl
from jax.experimental.pallas import tpu as pltpu


# ------------------- Fused kernel: encoder + proto head + CE -----------------
def fused_proto_kernel(x_ref, w_ref, b_ref, o_ref, *, E, N, K, Q, tau):
    """E few-shot episodes per grid step, fully fused.

    x_ref: (E*B, F)  bf16  flattened images of E episodes (B = N*(K+Q))
    w_ref: (F, D)    bf16  encoder weight (VMEM-resident across steps)
    b_ref: (1, D)    f32   encoder bias
    o_ref: (E, 128)  f32   per-episode loss broadcast across the 128 lanes
    """
    B = N * (K + Q)
    NK = N * K
    NQ = N * Q
    D = w_ref.shape[1]

    # ---- encoder: bf16 MXU matmul with f32 accumulation (E*B rows >= 256) ---
    emb = jnp.dot(x_ref[...], w_ref[...], preferred_element_type=jnp.float32)
    emb = emb + b_ref[...]                                  # (E*B, D) f32
    emb = emb.reshape(E, B, D)

    support = emb[:, :NK, :]                                # (E, N*K, D)
    query = emb[:, NK:, :]                                  # (E, N*Q, D)

    # ---- prototypes: per-class mean over K shots (VPU adds, shot-major) -----
    proto = support[:, 0:N, :]
    for k in range(1, K):
        proto = proto + support[:, k * N:(k + 1) * N, :]
    proto = proto * (1.0 / K)                               # (E, N, D)

    # ---- F.normalize(proto, p=2, dim=1, eps=1e-12) via rsqrt (EUP) ----------
    sumsq = jnp.sum(proto * proto, axis=-1, keepdims=True)
    proto = proto * jax.lax.rsqrt(jnp.maximum(sumsq, 1e-24))

    # ---- query logits = query @ proto.T / tau (bf16 operands, f32 acc) ------
    logits = jnp.einsum(
        'eqd,end->eqn',
        query.astype(jnp.bfloat16), proto.astype(jnp.bfloat16),
        preferred_element_type=jnp.float32) * (1.0 / tau)   # (E, NQ, N)

    # ---- mean cross-entropy per episode; target[q] = q % N ------------------
    row = jax.lax.broadcasted_iota(jnp.int32, (E, NQ, N), 1)
    col = jax.lax.broadcasted_iota(jnp.int32, (E, NQ, N), 2)
    is_tgt = col == (row % N)

    m = jnp.max(logits, axis=-1, keepdims=True)
    lse = m + jnp.log(jnp.sum(jnp.exp(logits - m), axis=-1, keepdims=True))
    picked = jnp.sum(jnp.where(is_tgt, logits, 0.0), axis=-1, keepdims=True)
    loss_e = jnp.sum(lse - picked, axis=1) * (1.0 / NQ)     # (E, 1)

    # lane-dense store: loss of episode e broadcast across row e's 128 lanes
    o_ref[...] = jnp.broadcast_to(loss_e, (E, 128))


# ------------------------------- Wrappers -------------------------------------
def mymodel_losses(images, w_enc, b_enc, *, N, K, Q, tau, episodes_per_step=None):
    """Batched episodes: images (T, B, C, H, W) -> per-episode CE loss (T,)."""
    T = images.shape[0]
    B = N * (K + Q)
    assert images.shape[1] == B, "episode batch must be N*(K+Q)"
    F_dim = int(np.prod(images.shape[2:]))
    D = w_enc.shape[1]

    # Batch enough episodes per grid step to fill >=256 MXU rows (v6e/v7x).
    if episodes_per_step is None:
        episodes_per_step = max(1, pl.cdiv(256, B))
    E = int(episodes_per_step)
    num_steps = pl.cdiv(T, E)
    Tp = num_steps * E

    x = images.reshape(T, B, F_dim)
    if Tp != T:
        # Zero-pad tail episodes (independent inside the kernel; sliced off below).
        x = jnp.concatenate(
            [x, jnp.zeros((Tp - T, B, F_dim), dtype=x.dtype)], axis=0)
    x = x.reshape(num_steps, E * B, F_dim).astype(jnp.bfloat16)
    w = w_enc.astype(jnp.bfloat16)
    b = b_enc.reshape(1, D).astype(jnp.float32)

    flops = 2 * Tp * B * F_dim * D + 2 * Tp * (N * Q) * D * N
    transcendentals = Tp * (N * Q) * N + Tp * (N * Q) + Tp * N
    bytes_accessed = (x.size * 2 + w.size * 2 + b.size * 4
                      + num_steps * E * 128 * 4)

    out = pl.pallas_call(
        functools.partial(fused_proto_kernel, E=E, N=N, K=K, Q=Q, tau=tau),
        out_shape=jax.ShapeDtypeStruct((num_steps, E, 128), jnp.float32),
        grid=(num_steps,),
        in_specs=[
            # leading grid dim squeezed out of the kernel view
            pl.BlockSpec((None, E * B, F_dim), lambda s: (s, 0, 0)),
            pl.BlockSpec((F_dim, D), lambda s: (0, 0)),   # shared, VMEM-resident
            pl.BlockSpec((1, D), lambda s: (0, 0)),       # shared bias
        ],
        out_specs=pl.BlockSpec((None, E, 128), lambda s: (s, 0, 0)),
        compiler_params=pltpu.CompilerParams(
            dimension_semantics=("parallel",),
        ),
        cost_estimate=pl.CostEstimate(
            flops=int(flops),
            transcendentals=int(transcendentals),
            bytes_accessed=int(bytes_accessed),
        ),
    )(x, w, b)
    return out[:, :, 0].reshape(-1)[:T]


def mymodel_loss(images, w_enc, b_enc, *, N, K, Q, tau):
    """Single episode (matches MyModel.forward(..., output_type='loss'))."""
    return mymodel_losses(images[None], w_enc, b_enc, N=N, K=K, Q=Q, tau=tau)[0]


# --------------------------- Pure-JAX reference -------------------------------
def reference_loss(images, w_enc, b_enc, *, N, K, Q, tau):
    """Reference with the same dtype flow (bf16 GEMM operands, f32 accumulate)."""
    B = N * (K + Q)
    x = images.reshape(B, -1).astype(jnp.bfloat16)
    emb = jnp.dot(x, w_enc.astype(jnp.bfloat16),
                  preferred_element_type=jnp.float32) + b_enc.astype(jnp.float32)
    support, query = emb[: N * K], emb[N * K:]
    proto = support.reshape(K, N, -1).mean(axis=0)
    sumsq = jnp.sum(proto * proto, axis=1, keepdims=True)
    proto = proto * jax.lax.rsqrt(jnp.maximum(sumsq, 1e-24))
    logits = jnp.dot(query.astype(jnp.bfloat16), proto.astype(jnp.bfloat16).T,
                     preferred_element_type=jnp.float32) / tau
    targets = jnp.tile(jnp.arange(N), Q)
    lse = jax.scipy.special.logsumexp(logits, axis=1)
    return jnp.mean(lse - logits[jnp.arange(N * Q), targets])


if __name__ == "__main__":
    # Small few-shot configuration: N classes, K support shots, Q query shots.
    N, K, Q = 4, 2, 2
    C, H, W = 4, 8, 8               # F_dim = 256 (multiple of 128)
    D = 128                         # lane-dense encoder width
    tau = 0.5
    B = N * (K + Q)                 # 16 images per episode
    T = 64                          # 64 episodes -> 4 grid steps of 16 episodes
    F_dim = C * H * W

    key = jax.random.PRNGKey(0)
    k_img, k_w, k_b = jax.random.split(key, 3)
    images = jax.random.normal(k_img, (T, B, C, H, W), dtype=jnp.float32)
    w_enc = jax.random.normal(k_w, (F_dim, D), dtype=jnp.float32) * 0.05
    b_enc = jax.random.normal(k_b, (D,), dtype=jnp.float32) * 0.01

    # Batched (grid) path
    losses = mymodel_losses(images, w_enc, b_enc, N=N, K=K, Q=Q, tau=tau)
    losses = jax.block_until_ready(losses)

    ref = jax.vmap(
        lambda im: reference_loss(im, w_enc, b_enc, N=N, K=K, Q=Q, tau=tau)
    )(images)
    np.testing.assert_allclose(np.asarray(losses), np.asarray(ref),
                               rtol=2e-3, atol=2e-3)

    # Single-episode path (module-equivalent API)
    loss0 = mymodel_loss(images[0], w_enc, b_enc, N=N, K=K, Q=Q, tau=tau)
    loss0 = jax.block_until_ready(loss0)
    np.testing.assert_allclose(np.asarray(loss0), np.asarray(ref[0]),
                               rtol=2e-3, atol=2e-3)

    print("KERNEL_OK")
</pallas_src>

<mosaic_0001>
module attributes {stable_mosaic.version = 11 : i64} {
  func.func @fused_proto_kernel(%arg0: i32, %arg1: memref<1x256x256xbf16, #tpu.memory_space<vmem>>, %arg2: memref<256x128xbf16, #tpu.memory_space<vmem>>, %arg3: memref<1x128xf32, #tpu.memory_space<vmem>>, %arg4: memref<1x16x128xf32, #tpu.memory_space<vmem>>) attributes {dimension_semantics = [#tpu.dimension_semantics<parallel>], iteration_bounds = array<i64: 4>, scalar_prefetch = 0 : i64, scratch_operands = 0 : i64, tpu.core_type = #tpu.core_type<tc>, window_params = [{transform_indices = @transform_0, window_bounds = array<i64: 1, 256, 256>}, {pipeline_mode = #tpu.pipeline_mode<synchronous>, transform_indices = @transform_1, window_bounds = array<i64: 256, 128>}, {pipeline_mode = #tpu.pipeline_mode<synchronous>, transform_indices = @transform_2, window_bounds = array<i64: 1, 128>}, {transform_indices = @transform_3, window_bounds = array<i64: 1, 16, 128>}]} {
    %c0 = arith.constant 0 : index
    %c0_0 = arith.constant 0 : index
    %c0_1 = arith.constant 0 : index
    %0 = vector.load %arg1[%c0, %c0_0, %c0_1] : memref<1x256x256xbf16, #tpu.memory_space<vmem>>, vector<1x256x256xbf16>
    %1 = vector.shape_cast %0 : vector<1x256x256xbf16> to vector<256x256xbf16>
    %c0_2 = arith.constant 0 : index
    %c0_3 = arith.constant 0 : index
    %2 = vector.load %arg2[%c0_2, %c0_3] : memref<256x128xbf16, #tpu.memory_space<vmem>>, vector<256x128xbf16>
    %cst = arith.constant dense<0.000000e+00> : vector<256x128xf32>
    %3 = tpu.matmul %1, %2, %cst {dimension_numbers = #tpu.dot_dimension_numbers<[1], [0], [0], [1], [0, 0, 1, 1], [], []>} : vector<256x256xbf16>, vector<256x128xbf16>, vector<256x128xf32> -> vector<256x128xf32>
    %c0_4 = arith.constant 0 : index
    %c0_5 = arith.constant 0 : index
    %4 = vector.load %arg3[%c0_4, %c0_5] : memref<1x128xf32, #tpu.memory_space<vmem>>, vector<1x128xf32>
    %5 = vector.broadcast %4 : vector<1x128xf32> to vector<256x128xf32>
    %6 = arith.addf %3, %5 : vector<256x128xf32>
    %7 = vector.shape_cast %6 : vector<256x128xf32> to vector<16x16x128xf32>
    %8 = vector.extract_strided_slice %7 {offsets = [0, 0, 0], sizes = [16, 8, 128], strides = [1, 1, 1]} : vector<16x16x128xf32> to vector<16x8x128xf32>
    %9 = vector.extract_strided_slice %7 {offsets = [0, 8, 0], sizes = [16, 8, 128], strides = [1, 1, 1]} : vector<16x16x128xf32> to vector<16x8x128xf32>
    %10 = vector.extract_strided_slice %8 {offsets = [0, 0, 0], sizes = [16, 4, 128], strides = [1, 1, 1]} : vector<16x8x128xf32> to vector<16x4x128xf32>
    %11 = vector.extract_strided_slice %8 {offsets = [0, 4, 0], sizes = [16, 4, 128], strides = [1, 1, 1]} : vector<16x8x128xf32> to vector<16x4x128xf32>
    %12 = arith.addf %10, %11 : vector<16x4x128xf32>
    %cst_6 = arith.constant 5.000000e-01 : f32
    %13 = vector.broadcast %cst_6 : f32 to vector<16x4x128xf32>
    %14 = arith.mulf %12, %13 : vector<16x4x128xf32>
    %15 = arith.mulf %14, %14 : vector<16x4x128xf32>
    %cst_7 = arith.constant dense<0.000000e+00> : vector<16x4xf32>
    %16 = vector.multi_reduction <add>, %15, %cst_7 [2] : vector<16x4x128xf32> to vector<16x4xf32>
    %17 = vector.shape_cast %16 : vector<16x4xf32> to vector<16x4x1xf32>
    %cst_8 = arith.constant 1.000000e-24 : f32
    %18 = vector.broadcast %cst_8 : f32 to vector<16x4x1xf32>
    %19 = arith.maximumf %17, %18 : vector<16x4x1xf32>
    %20 = math.rsqrt %19 : vector<16x4x1xf32>
    %21 = vector.broadcast %20 : vector<16x4x1xf32> to vector<16x4x128xf32>
    %22 = arith.mulf %14, %21 : vector<16x4x128xf32>
    %23 = arith.truncf %9 : vector<16x8x128xf32> to vector<16x8x128xbf16>
    %24 = arith.truncf %22 : vector<16x4x128xf32> to vector<16x4x128xbf16>
    "tpu.trace_start"() <{level = 10 : i32, message = "eqd,end->eqn"}> : () -> ()
    %cst_9 = arith.constant dense<0.000000e+00> : vector<16x8x4xf32>
    %25 = tpu.matmul %23, %24, %cst_9 {dimension_numbers = #tpu.dot_dimension_numbers<[2], [2], [1], [1], [0, 0, 0, 1, 1, 1], [0], [0]>} : vector<16x8x128xbf16>, vector<16x4x128xbf16>, vector<16x8x4xf32> -> vector<16x8x4xf32>
    "tpu.trace_stop"() : () -> ()
    %cst_10 = arith.constant 2.000000e+00 : f32
    %26 = vector.broadcast %cst_10 : f32 to vector<16x8x4xf32>
    %27 = arith.mulf %25, %26 : vector<16x8x4xf32>
    %28 = tpu.iota {dimensions = array<i32: 1>} : vector<16x8x4xi32>
    %29 = tpu.iota {dimensions = array<i32: 2>} : vector<16x8x4xi32>
    %c4_i32 = arith.constant 4 : i32
    %c0_i32 = arith.constant 0 : i32
    %30 = arith.cmpi eq, %c4_i32, %c0_i32 : i32
    %c1_i32 = arith.constant 1 : i32
    %31 = arith.select %30, %c1_i32, %c4_i32 : i32
    %32 = vector.broadcast %31 : i32 to vector<16x8x4xi32>
    %33 = arith.remsi %28, %32 : vector<16x8x4xi32>
    %c0_i32_11 = arith.constant 0 : i32
    %34 = vector.broadcast %c0_i32_11 : i32 to vector<16x8x4xi32>
    %35 = arith.cmpi ne, %33, %34 : vector<16x8x4xi32>
    %c0_i32_12 = arith.constant 0 : i32
    %36 = vector.broadcast %c0_i32_12 : i32 to vector<16x8x4xi32>
    %37 = arith.cmpi slt, %33, %36 : vector<16x8x4xi32>
    %c0_i32_13 = arith.constant 0 : i32
    %38 = arith.cmpi slt, %31, %c0_i32_13 : i32
    %39 = vector.broadcast %38 : i1 to vector<16x8x4xi1>
    %40 = vector.broadcast %39 : vector<16x8x4xi1> to vector<16x8x4xi1>
    %41 = arith.xori %37, %40 : vector<16x8x4xi1>
    %42 = arith.andi %41, %35 : vector<16x8x4xi1>
    %43 = vector.broadcast %31 : i32 to vector<16x8x4xi32>
    %44 = arith.addi %33, %43 : vector<16x8x4xi32>
    %45 = arith.select %42, %44, %33 : vector<16x8x4xi1>, vector<16x8x4xi32>
    %46 = arith.cmpi eq, %29, %45 : vector<16x8x4xi32>
    %cst_14 = arith.constant dense<0xFF800000> : vector<16x8xf32>
    %47 = vector.multi_reduction <maximumf>, %27, %cst_14 [2] : vector<16x8x4xf32> to vector<16x8xf32>
    %48 = vector.shape_cast %47 : vector<16x8xf32> to vector<16x8x1xf32>
    %49 = vector.broadcast %48 : vector<16x8x1xf32> to vector<16x8x4xf32>
    %50 = arith.subf %27, %49 : vector<16x8x4xf32>
    %51 = math.exp %50 : vector<16x8x4xf32>
    %cst_15 = arith.constant dense<0.000000e+00> : vector<16x8xf32>
    %52 = vector.multi_reduction <add>, %51, %cst_15 [2] : vector<16x8x4xf32> to vector<16x8xf32>
    %53 = vector.shape_cast %52 : vector<16x8xf32> to vector<16x8x1xf32>
    %54 = math.log %53 : vector<16x8x1xf32>
    %55 = arith.addf %48, %54 : vector<16x8x1xf32>
    %cst_16 = arith.constant 0.000000e+00 : f32
    %56 = vector.broadcast %cst_16 : f32 to vector<16x8x4xf32>
    %57 = arith.select %46, %27, %56 : vector<16x8x4xi1>, vector<16x8x4xf32>
    %cst_17 = arith.constant dense<0.000000e+00> : vector<16x8xf32>
    %58 = vector.multi_reduction <add>, %57, %cst_17 [2] : vector<16x8x4xf32> to vector<16x8xf32>
    %59 = vector.shape_cast %58 : vector<16x8xf32> to vector<16x8x1xf32>
    %60 = arith.subf %55, %59 : vector<16x8x1xf32>
    %cst_18 = arith.constant dense<0.000000e+00> : vector<16x1xf32>
    %61 = vector.multi_reduction <add>, %60, %cst_18 [1] : vector<16x8x1xf32> to vector<16x1xf32>
    %cst_19 = arith.constant 1.250000e-01 : f32
    %62 = vector.broadcast %cst_19 : f32 to vector<16x1xf32>
    %63 = arith.mulf %61, %62 : vector<16x1xf32>
    %64 = vector.shape_cast %63 : vector<16x1xf32> to vector<16x1xf32>
    %65 = vector.broadcast %64 : vector<16x1xf32> to vector<16x128xf32>
    %c0_20 = arith.constant 0 : index
    %c0_21 = arith.constant 0 : index
    %c0_22 = arith.constant 0 : index
    %66 = vector.load %arg4[%c0_20, %c0_21, %c0_22] : memref<1x16x128xf32, #tpu.memory_space<vmem>>, vector<1x16x128xf32>
    %67 = vector.shape_cast %66 : vector<1x16x128xf32> to vector<16x128xf32>
    %68 = vector.shape_cast %65 : vector<16x128xf32> to vector<1x16x128xf32>
    tpu.vector_store %arg4[%c0_20, %c0_21, %c0_22], %68 {strides = array<i32>} : memref<1x16x128xf32, #tpu.memory_space<vmem>>, vector<1x16x128xf32>,
    return
  }
  func.func @transform_0(%arg0: i32) -> (i32, i32, i32) {
    %c0_i32 = arith.constant 0 : i32
    %c0_i32_0 = arith.constant 0 : i32
    %c0_i32_1 = arith.constant 0 : i32
    return %arg0, %c0_i32, %c0_i32_0 : i32, i32, i32
  }
  func.func @transform_1(%arg0: i32) -> (i32, i32) {
    %c0_i32 = arith.constant 0 : i32
    %c0_i32_0 = arith.constant 0 : i32
    %c0_i32_1 = arith.constant 0 : i32
    return %c0_i32, %c0_i32_0 : i32, i32
  }
  func.func @transform_2(%arg0: i32) -> (i32, i32) {
    %c0_i32 = arith.constant 0 : i32
    %c0_i32_0 = arith.constant 0 : i32
    %c0_i32_1 = arith.constant 0 : i32
    return %c0_i32, %c0_i32_0 : i32, i32
  }
  func.func @transform_3(%arg0: i32) -> (i32, i32, i32) {
    %c0_i32 = arith.constant 0 : i32
    %c0_i32_0 = arith.constant 0 : i32
    %c0_i32_1 = arith.constant 0 : i32
    return %arg0, %c0_i32, %c0_i32_0 : i32, i32, i32
  }
}

</mosaic_0001>

<bundles_post_ra>
// kernel: tpu_custom_call.1
= control target key start
LH: loop header
LB: loop body
LE: loop exit
PB: predicated region body
PF: predicated region fallthrough
CT: control target
= control target key end

     0   :  { %8 = vsyncpa [#allocation3], 0  ;;  %s3522_s0 = inlined_call_operand.hbm [shape: bf16[4,256,256], index: 0, kind: input, shape index: {}]   ;;  %s3523_s1 = inlined_call_operand.hbm [shape: bf16[256,128], index: 1, kind: input, shape index: {}]   ;;  %s3524_s2 = inlined_call_operand.vmem [shape: f32[1,128], index: 2, kind: input, shape index: {}]   ;;  %s3525_s3 = inlined_call_operand.hbm [shape: f32[4,16,128], index: 3, kind: output, shape index: {}]  }
   0x1   :  { %10 = vsyncpa [#allocation3 + $0x1], 0 }
   0x2   :  { %11 = vsyncpa [#allocation6], 0 }
   0x3   :  { %12 = vsyncpa [#allocation4], 0 }
   0x4   :  { %14 = vsyncpa [#allocation4 + $0x1], 0  ;;  %s2807_s12 = smov 0   ;;  %s2809_s13 = smov 0  }
   0x5   :  { %s2811_s14 = smov 0   ;;  %s2813_s15 = smov 0  }
   0x6 LB: > { %s2828_s16 = sadd.s32 4294967295, %s2774_s15   ;;  %s2114_s17 = sadd.s32 4294967294, %s2774_s15   ;;  %s2774_s15 = sphi %s2813_s15, %s3546_s15   ;;  %s2770_s14 = sphi %s2811_s14, %s3545_s14   ;;  %s2766_s13 = sphi %s2809_s13, %s3544_s13   ;;  %s2762_s12 = sphi %s2807_s12, %s3543_s12  }
   0x7   : > { %p40_p0 = scmp.ne.s32.totalorder %s2766_s13, %s2762_s12  ;;  %p3526_p1 = scmp.eq.s32.totalorder %s2828_s16, 0 }
   0x8   : > { %p112_p3 = scmp.eq.s32.totalorder %s2114_s17, 3  ;;  %p2115_p5 = scmp.ge.s32.totalorder %s2774_s15, 1 }
   0x9   : > { %p2837_p4 = por %p3526_p1, %p40_p0  ;;  %p119_p7 = scmp.lt.s32.totalorder %s2774_s15, 5 }
   0xa   : > { %p2842_p6 = por %p112_p3, %p40_p0  ;;  %s2776_s21 = smov [#allocation5]  }
   0xb   : > { %s3529_s18 = scalar_select %p2837_p4, 1, 0 }
   0xc   : > { %s3530_s19 = scalar_select %p2842_p6, 1, 0 }
   0xd   : > { %p2847_p8 = pnand %p2115_p5, %p119_p7  ;;  %s131_s22 = sshll.u32 %s2776_s21, 4  ;;  %s132_s22 = int_to_ptr.vmem [resolvable:$true] %s131_s22 }
   0xe   : > { %s2860_s24 = sadd.s32 1, %s2774_s15   ;;  %s27_s25 = sadd.s32 1, %s2770_s14 }
   0xf   : > { %s3531_s20 = scalar_select %p2847_p8, 1, 0 }
  0x10   : > { %p2429_p9 = pneg %p2847_p8  ;;  %s24_s26 = ssub.s32 %s2774_s15, %s2860_s24 }
  0x11   : > { %s2646_s29 = scalar_lea.hbm %s3523_s1, 2048 }
  0x12   : > { %p2855_p10 = pnand %p2429_p9, %p3526_p1  ;;  %p2647_p11 = scmp.ne.s32.totalorder %s3523_s1, %s2646_s29 }
  0x13   : > { %p2653_p3 = scmp.lt.u32.totalorder %s2646_s29, %s3523_s1 }
  0x14   : > { %p2648_p12 = pneg %p2855_p10 }
  0x16   : > { %p2649_p13 = pnand %p2648_p12, %p2647_p11 }
  0x18   : > { %p2650_p0 = pneg %p2649_p13 }
  0x1a   : > { %p2655_p5 = pnand %p2653_p3, %p2650_p0 }
  0x1c   : > { %2658 = shalt.err (!%p2655_p5)
}
  0x1d   : > { %s2659_s7 = scalar_lea.vmem %s132_s22, 2048  ;;  %p2667_p2 = scmp.lt.s32.totalorder %s132_s22, %s132_s22 }
  0x1e   : > { %p2660_p7 = scmp.ne.s32.totalorder %s132_s22, %s2659_s7  ;;  %p2668_p6 = scmp.lt.s32.totalorder %s2659_s7, %s2659_s7 }
  0x20   : > { %p2662_p9 = pnand %p2660_p7, %p2648_p12  ;;  %p2669_p4 = por %p2668_p6, %p2667_p2 }
  0x22   : > { %p2663_p1 = pneg %p2662_p9 }
  0x24   : > { %p2670_p8 = pnand %p2669_p4, %p2663_p1 }
  0x26   : > { %2673 = shalt.err (!%p2670_p8)
}
  0x27   : > { %s2777_s8 = smov 64   ;;  %s2778_s9 = smov 4  }
  0x28   : > { %2432 = dma.hbm_to_vmem [thread:$0]  (!%p2855_p10), %s3523_s1, 2048, %s132_s22, [#allocation6], %s2777_s8, %s2777_s8, %s2778_s9  }
  0x29   : > { %p25_p11 = scmp.eq.s32.totalorder %s24_s26, 0  ;;  %p34_p2 = scmp.ne.s32.totalorder %s2770_s14, %s2766_s13 }
  0x2a   : > { %p35_p1 = scmp.eq.s32.totalorder %s2774_s15, 0  ;;  %p2442_p4 = scmp.lt.s32.totalorder %s2774_s15, 4 }
  0x2b   : > { %s2886_s17 = scalar_select %p25_p11, %s2770_s14, %s27_s25  }
  0x2c   : > { %p36_p6 = por %p35_p1, %p34_p2  ;;  %p3533_p8 = scmp.eq.s32.totalorder %s2828_s16, 3 }
  0x2d   : > { %s148_s27 = sand.u32 1, %s2770_s14   ;;  %s2179_s28 = sshll.u32 %s2774_s15, 12 }
  0x2e   : > { %p2890_p12 = por %p3533_p8, %p34_p2  ;;  %s2118_s29 = sshll.u32 %s148_s27, 8 }
  0x2f   : > { %s2899_s4 = scalar_lea.hbm %s3522_s0, %s2179_s28  ;;  %s152_s22 = scalar_lea.vmem [#allocation2], %s2118_s29 }
  0x30   : > { %s159_s25 = sshll.u32 %s152_s22, 4  ;;  %p2901_p10 = pnand %p2442_p4, %p36_p6  ;;  %s2905_s25 = int_to_ptr.vmem [resolvable:$true] %s159_s25 }
  0x31   : > { %s2907_s5 = scalar_lea.sflag [#allocation3], %s148_s27  ;;  %s2674_s6 = scalar_lea.hbm %s2899_s4, 4096 }
  0x32   : > { %p2675_p13 = scmp.ne.s32.totalorder %s2899_s4, %s2674_s6  ;;  %p2676_p0 = pneg %p2901_p10 }
  0x33   : > { %s2679_s9 = scalar_lea.hbm %s3522_s0, 16384  ;;  %p2680_p7 = scmp.lt.u32.totalorder %s2899_s4, %s3522_s0 }
  0x34   : > { %p2677_p3 = pnand %p2676_p0, %p2675_p13  ;;  %p2681_p9 = scmp.lt.u32.totalorder %s2679_s9, %s2674_s6 }
  0x35   : > { %p2683_p2 = scmp.lt.u32.totalorder %s2674_s6, %s2899_s4 }
  0x36   : > { %p2678_p5 = pneg %p2677_p3  ;;  %p2682_p11 = por %p2681_p9, %p2680_p7 }
  0x38   : > { %p2684_p1 = por %p2683_p2, %p2682_p11 }
  0x3a   : > { %p2685_p4 = pnand %p2684_p1, %p2678_p5 }
  0x3c   : > { %2688 = shalt.err (!%p2685_p4)
}
  0x3d   : > { %s2689_s27 = scalar_lea.vmem %s2905_s25, 4096  ;;  %s2779_s28 = smov [#allocation2]  }
  0x3e   : > { %p2690_p6 = scmp.ne.s32.totalorder %s2905_s25, %s2689_s27  ;;  %s2694_s29 = sshll.u32 %s2779_s28, 4  ;;  %s2695_s29 = int_to_ptr.vmem [resolvable:$false] %s2694_s29 }
  0x3f   : > { %s2696_s23 = scalar_lea.vmem %s2695_s29, 8192  ;;  %p2697_p3 = scmp.lt.s32.totalorder %s2905_s25, %s2695_s29 }
  0x40   : > { %p2692_p8 = pnand %p2690_p6, %p2676_p0  ;;  %p2698_p7 = scmp.lt.s32.totalorder %s2696_s23, %s2689_s27 }
  0x42   : > { %p2693_p13 = pneg %p2692_p8  ;;  %p2699_p9 = por %p2698_p7, %p2697_p3 }
  0x44   : > { %p2700_p11 = pnand %p2699_p9, %p2693_p13 }
  0x46   : > { %2703 = shalt.err (!%p2700_p11)
}
  0x47   : > { %s2780_s30 = smov 128   ;;  %s2781_s22 = smov 8  }
  0x48   : > { %2436 = dma.hbm_to_vmem [thread:$0]  (!%p2901_p10), %s2899_s4, 4096, %s2905_s25, %s2907_s5, %s2780_s30, %s2780_s30, %s2781_s22  }
  0x49   : > { %p3536_p0 = scmp.ne.s32.totalorder %s3531_s20, 0 }
  0x4a   : > { %s2938_s6 = sand.u32 (!%p3536_p0), 1, %s2766_s13   ;;  %p3537_p5 = scmp.ne.s32.totalorder (!%p3536_p0), %s3529_s18, 0 }
  0x4b   : > { %171 = sbr.rel (%p3536_p0) target bundleno = 1194 (0x4aa), region = 32  ;;  %s2122_s7 = sshll.u32 (!%p3536_p0), %s2938_s6, 8 }
  0x4c   : > { %s174_s8 = scalar_lea.sflag (!%p3536_p0), [#allocation3], %s2938_s6  ;;  %s2942_s9 = scalar_lea.vmem (!%p3536_p0), [#allocation2], %s2122_s7 }
  0x52   : > { %2749 = dma.done.wait (%p3537_p5), %s174_s8, 4096  }
  0x53   : > { %2751 = vsyncadd (%p3537_p5), %s174_s8, 4294963200  ;;  %p3538_p10 = scmp.eq.s32.totalorder %s2828_s16, 0 }
  0x55   : > { %2753 = dma.done.wait (%p3538_p10), [#allocation6], 2048   ;;  %p3539_p2 = pmov %p3538_p10 }
  0x56   : > { %v2486_v0 = vld [vmem:[#allocation5 + $0x40] sm:$0xff]   ;;  %v2488_v2 = vld [vmem:[#allocation5 + $0x48] sm:$0xff]   ;;  %v2490_v4 = vld [vmem:[#allocation5 + $0x50] sm:$0xff]   ;;  %vm789_vm0 = vcmask 1043456   ;;  %vm2783_vm1 = vmmov 0   ;;  %vm1591_vm2 = vcmask 31744  }
  0x57   : > { %2755 = vsyncadd (%p3539_p2), [#allocation6], 4294965248  ;;  %v2487_v1 = vld [vmem:[#allocation5] sm:$0xff]   ;;  %2181 = vmatprep.subr.bf16.mxu0 %v2486_v0  ;;  %v2489_v3 = vld [vmem:[#allocation5 + $0x8] sm:$0xff]   ;;  %vm1992_vm4 = vcmask 1041409   ;;  %vm1994_vm5 = vcmask 1042434  }
  0x58   : > { %2182 = vmatpush3.bf16.msra.mxu0 %v2487_v1  ;;  %v2491_v5 = vld [vmem:[#allocation5 + $0x10] sm:$0xff]   ;;  %v2492_v6 = vld [vmem:[#allocation5 + $0x58] sm:$0xff]   ;;  %v2494_v8 = vld [vmem:[#allocation5 + $0x60] sm:$0xff]   ;;  %vm1996_vm6 = vcmask 1043459   ;;  %vm1998_vm7 = vcmask 1044484   ;;  %vm2000_vm8 = vcmask 1045509  }
  0x59   : > { %2183 = vmatprep.subr.bf16.mxu0 %v2488_v2  ;;  %v2493_v7 = vld [vmem:[#allocation5 + $0x18] sm:$0xff]   ;;  %v2495_v9 = vld [vmem:[#allocation5 + $0x20] sm:$0xff]   ;;  %v2496_v10 = vld [vmem:[#allocation5 + $0x68] sm:$0xff]   ;;  %vm2002_vm9 = vcmask 1046534   ;;  %s2124_s4 = sshll.u32 %s2938_s6, 4  ;;  %vm2004_vm10 = vcmask 1047559  }
  0x5a   : > { %v2504_v11 = vld [vmem:[%s2942_s9 + $0x4] ss:$8 sps:$4 sm:$0xff]   ;;  %v2498_v13 = vld [vmem:[#allocation5 + $0x70] sm:$0xff]   ;;  %v2500_v15 = vld [vmem:[#allocation5 + $0x78] sm:$0xff]   ;;  %s3457_s25 = scalar_lea.vmem [#allocation7], %s2124_s4  ;;  %s2180_s26 = sshll.u32 %s2828_s16, 8 }
  0x5b   : > { %v2497_v12 = vld [vmem:[#allocation5 + $0x28] sm:$0xff]   ;;  %564 = vmatprep.mubr.bf16.mxu0 %v2504_v11  ;;  %v2499_v14 = vld [vmem:[#allocation5 + $0x30] sm:$0xff]   ;;  %v2501_v16 = vld [vmem:[#allocation5 + $0x38] sm:$0xff]   ;;  %s2031_s5 = sshll.u32 %s3457_s25, 4  ;;  %s3474_s27 = scalar_lea.hbm %s3525_s3, %s2180_s26  ;;  %s3476_s5 = int_to_ptr.vmem [resolvable:$true] %s2031_s5 }
  0x5c   : > { %2184 = vmatpush3.bf16.msra.mxu0 %v2489_v3  ;;  %v2502_v17 = vld [vmem:[%s2942_s9] ss:$8 sps:$4 sm:$0xff]   ;;  %v2505_v18 = vld [vmem:[%s2942_s9 + $0x14] ss:$8 sps:$4 sm:$0xff]   ;;  %v2507_v19 = vld [vmem:[%s2942_s9 + $0x10] ss:$8 sps:$4 sm:$0xff]  }
  0x5d   : > { %2185 = vmatprep.subr.bf16.mxu0 %v2490_v4  ;;  %v2508_v20 = vld [vmem:[%s2942_s9 + $0x24] ss:$8 sps:$4 sm:$0xff]   ;;  %v2510_v21 = vld [vmem:[%s2942_s9 + $0x20] ss:$8 sps:$4 sm:$0xff]   ;;  %v2511_v22 = vld [vmem:[%s2942_s9 + $0x34] ss:$8 sps:$4 sm:$0xff]  }
  0x5e   : > { %v2513_v23 = vld [vmem:[%s2942_s9 + $0x30] ss:$8 sps:$4 sm:$0xff]   ;;  %v2514_v24 = vld [vmem:[%s2942_s9 + $0x44] ss:$8 sps:$4 sm:$0xff]   ;;  %v2516_v25 = vld [vmem:[%s2942_s9 + $0x40] ss:$8 sps:$4 sm:$0xff]  }
  0x5f   : > { %v2517_v26 = vld [vmem:[%s2942_s9 + $0x54] ss:$8 sps:$4 sm:$0xff]   ;;  %v2519_v27 = vld [vmem:[%s2942_s9 + $0x50] ss:$8 sps:$4 sm:$0xff]   ;;  %v2520_v28 = vld [vmem:[%s2942_s9 + $0x64] ss:$8 sps:$4 sm:$0xff]  }
  0x60   : > { %2186 = vmatpush3.bf16.msra.mxu0 %v2491_v5  ;;  %v2522_v29 = vld [vmem:[%s2942_s9 + $0x60] ss:$8 sps:$4 sm:$0xff]   ;;  %v2523_v30 = vld [vmem:[%s2942_s9 + $0x74] ss:$8 sps:$4 sm:$0xff]   ;;  %v2525_v31 = vld [vmem:[%s2942_s9 + $0x70] ss:$8 sps:$4 sm:$0xff]  }
  0x61   : > { %2187 = vmatprep.subr.bf16.mxu0 %v2492_v6  ;;  %v2526_v32 = vld [vmem:[%s2942_s9 + $0x84] ss:$8 sps:$4 sm:$0xff]   ;;  %v2528_v33 = vld [vmem:[%s2942_s9 + $0x80] ss:$8 sps:$4 sm:$0xff]   ;;  %v2529_v34 = vld [vmem:[%s2942_s9 + $0x94] ss:$8 sps:$4 sm:$0xff]  }
  0x62   : > { %v2531_v35 = vld [vmem:[%s2942_s9 + $0x90] ss:$8 sps:$4 sm:$0xff]   ;;  %v2532_v36 = vld [vmem:[%s2942_s9 + $0xa4] ss:$8 sps:$4 sm:$0xff]   ;;  %v2534_v37 = vld [vmem:[%s2942_s9 + $0xa0] ss:$8 sps:$4 sm:$0xff]  }
  0x63   : > { %v2535_v38 = vld [vmem:[%s2942_s9 + $0xb4] ss:$8 sps:$4 sm:$0xff]   ;;  %v2537_v39 = vld [vmem:[%s2942_s9 + $0xb0] ss:$8 sps:$4 sm:$0xff]   ;;  %v2538_v40 = vld [vmem:[%s2942_s9 + $0xc4] ss:$8 sps:$4 sm:$0xff]  }
  0x64   : > { %2188 = vmatpush3.bf16.msra.mxu0 %v2493_v7  ;;  %v2540_v41 = vld [vmem:[%s2942_s9 + $0xc0] ss:$8 sps:$4 sm:$0xff]   ;;  %v2541_v42 = vld [vmem:[%s2942_s9 + $0xd4] ss:$8 sps:$4 sm:$0xff]   ;;  %v2543_v43 = vld [vmem:[%s2942_s9 + $0xd0] ss:$8 sps:$4 sm:$0xff]  }
  0x65   : > { %2189 = vmatprep.subr.bf16.mxu0 %v2494_v8  ;;  %v2544_v44 = vld [vmem:[%s2942_s9 + $0xe4] ss:$8 sps:$4 sm:$0xff]   ;;  %v2546_v45 = vld [vmem:[%s2942_s9 + $0xe0] ss:$8 sps:$4 sm:$0xff]   ;;  %v2547_v46 = vld [vmem:[%s2942_s9 + $0xf4] ss:$8 sps:$4 sm:$0xff]  }
  0x66   : > { %v2549_v47 = vld [vmem:[%s2942_s9 + $0xf0] ss:$8 sps:$4 sm:$0xff]   ;;  %v2987_v49 = vld [vmem:[%s3524_s2] ss:$0 sm:$0xff]  ;;  %s2018_s16 = scalar_lea.sflag [#allocation4], %s2938_s6  ;;  %s2704_s28 = scalar_lea.vmem %s3476_s5, 256 }
  0x67   : > { %p2705_p1 = scmp.ne.s32.totalorder %s3476_s5, %s2704_s28  ;;  %s2784_s29 = smov [#allocation7]  }
  0x68   : > { %2190 = vmatpush3.bf16.msra.mxu0 %v2495_v9  ;;  %s2708_s23 = sshll.u32 %s2784_s29, 4  ;;  %s2709_s23 = int_to_ptr.vmem [resolvable:$false] %s2708_s23 }
  0x69   : > { %2191 = vmatprep.subr.bf16.mxu0 %v2496_v10  ;;  %p2706_p4 = pnand %p2705_p1, %p2890_p12  ;;  %s2710_s30 = scalar_lea.vmem %s2709_s23, 512 }
  0x6a   : > { %p2711_p8 = scmp.lt.s32.totalorder %s3476_s5, %s2709_s23  ;;  %p2712_p13 = scmp.lt.s32.totalorder %s2710_s30, %s2704_s28 }
  0x6b   : > { %p2707_p6 = pneg %p2706_p4 }
  0x6c   : > { %2192 = vmatpush3.bf16.msra.mxu0 %v2497_v12  ;;  %p2713_p3 = por %p2712_p13, %p2711_p8 }
  0x6d   : > { %2193 = vmatprep.subr.bf16.mxu0 %v2498_v13 }
  0x6e   : > { %p2714_p7 = pnand %p2713_p3, %p2707_p6 }
  0x70   : > { %2194 = vmatpush3.bf16.msra.mxu0 %v2499_v14 }
  0x71   : > { %2195 = vmatprep.subr.bf16.mxu0 %v2500_v15 }
  0x74   : > { %2196 = vmatpush3.bf16.msra.mxu0 %v2501_v16 }
  0x77   : > { %565 = vmatmul.mubr.bf16.vlgmr.msra.gmra.mrb[0].mxu0 %v2502_v17 }
  0x78   : > { %572 = vmatprep.mubr.bf16.mxu0 %v2505_v18 }
  0x7f   : > { %573 = vmatmul.mubr.bf16.gmra.mrb[4].mxu0 %v2507_v19 }
  0x80   : > { %580 = vmatprep.mubr.bf16.mxu0 %v2508_v20 }
  0x87   : > { %581 = vmatmul.mubr.bf16.gmra.mrb[8].mxu0 %v2510_v21 }
  0x88   : > { %588 = vmatprep.mubr.bf16.mxu0 %v2511_v22 }
  0x8f   : > { %589 = vmatmul.mubr.bf16.gmra.mrb[12].mxu0 %v2513_v23 }
  0x90   : > { %596 = vmatprep.mubr.bf16.mxu0 %v2514_v24 }
  0x97   : > { %597 = vmatmul.mubr.bf16.gmra.mrb[16].mxu0 %v2516_v25 }
  0x98   : > { %604 = vmatprep.mubr.bf16.mxu0 %v2517_v26 }
  0x9f   : > { %605 = vmatmul.mubr.bf16.gmra.mrb[20].mxu0 %v2519_v27 }
  0xa0   : > { %612 = vmatprep.mubr.bf16.mxu0 %v2520_v28 }
  0xa7   : > { %613 = vmatmul.mubr.bf16.gmra.mrb[24].mxu0 %v2522_v29 }
  0xa8   : > { %620 = vmatprep.mubr.bf16.mxu0 %v2523_v30 }
  0xaf   : > { %621 = vmatmul.mubr.bf16.gmra.mrb[28].mxu0 %v2525_v31 }
  0xb0   : > { %628 = vmatprep.mubr.bf16.mxu0 %v2526_v32 }
  0xb7   : > { %629 = vmatmul.mubr.bf16.gmra.mrb[32].mxu0 %v2528_v33 }
  0xb8   : > { %636 = vmatprep.mubr.bf16.mxu0 %v2529_v34 }
  0xbf   : > { %637 = vmatmul.mubr.bf16.gmra.mrb[36].mxu0 %v2531_v35 }
  0xc0   : > { %644 = vmatprep.mubr.bf16.mxu0 %v2532_v36 }
  0xc7   : > { %645 = vmatmul.mubr.bf16.gmra.mrb[40].mxu0 %v2534_v37 }
  0xc8   : > { %652 = vmatprep.mubr.bf16.mxu0 %v2535_v38 }
  0xcf   : > { %653 = vmatmul.mubr.bf16.gmra.mrb[44].mxu0 %v2537_v39 }
  0xd0   : > { %660 = vmatprep.mubr.bf16.mxu0 %v2538_v40 }
  0xd7   : > { %661 = vmatmul.mubr.bf16.gmra.mrb[48].mxu0 %v2540_v41 }
  0xd8   : > { %668 = vmatprep.mubr.bf16.mxu0 %v2541_v42 }
  0xdf   : > { %669 = vmatmul.mubr.bf16.gmra.mrb[52].mxu0 %v2543_v43 }
  0xe0   : > { %676 = vmatprep.mubr.bf16.mxu0 %v2544_v44 }
  0xe7   : > { %677 = vmatmul.mubr.bf16.gmra.mrb[56].mxu0 %v2546_v45 }
  0xe8   : > { %684 = vmatprep.mubr.bf16.mxu0 %v2547_v46 }
  0xef   : > { %685 = vmatmul.mubr.bf16.gmra.mrb[60].mxu0 %v2549_v47 }
 0x14a   : > { %v2197_v48 = vpop.f32.mrb[0].mxu0 }
 0x14b   : > { %v2198_v50 = vpop.f32.mrb[1].mxu0 }
 0x14c   : > { %v2199_v51 = vadd.f32 %v2198_v50, %v2197_v48  ;;  %v2200_v52 = vpop.f32.mrb[2].mxu0 }
 0x14d   : > { %v2201_v53 = vpop.f32.mrb[3].mxu0 }
 0x14e   : > { %v567_v54 = vadd.f32 %v2199_v51, %v2987_v49  ;;  %v2990_v55 = vadd.f32 %v2201_v53, %v2200_v52  ;;  %v2782_v52 = vmov 0.0  }
 0x14f   : > { %2325 = vmatprep.subr.bf16.mxu1 %v2782_v52  ;;  %2327 = vmatprep.mubr.msk.bf16.mxu1 %vm2783_vm1, %v2782_v52 }
 0x150   : > { %v709_v56 = vrot.slane %v567_v54, 4 }
 0x152   : > { %v2203_v57 = vpop.f32.mrb[4].mxu0  ;;  %v741_v58 = vadd.f32 %v709_v56, %v567_v54 }
 0x153   : > { %v2204_v59 = vpop.f32.mrb[5].mxu0 }
 0x154   : > { %v2205_v60 = vadd.f32 %v2204_v59, %v2203_v57  ;;  %v2206_v61 = vpop.f32.mrb[6].mxu0  ;;  %v2992_v62 = vmul.f32 0.5, %v741_v58 }
 0x155   : > { %v2207_v63 = vpop.f32.mrb[7].mxu0 }
 0x156   : > { %v575_v0 = vadd.f32 %v2205_v60, %v2987_v49  ;;  %v2995_v1 = vadd.f32 %v2207_v63, %v2206_v61  ;;  %v773_v2 = vmul.f32 %v2992_v62, %v2992_v62 }
 0x158   : > { %v710_v3 = vrot.slane %v575_v0, 4  ;;  %v790_v4 = vsel %vm789_vm0, %v773_v2, 0.0 }
 0x159   : > { %791 = vadd.xlane.f32.xlu0 %v790_v4 }
 0x15a   : > { %v742_v5 = vadd.f32 %v710_v3, %v575_v0  ;;  %v2209_v6 = vpop.f32.mrb[8].mxu0 }
 0x15b   : > { %v2210_v7 = vpop.f32.mrb[9].mxu0 }
 0x15c   : > { %v2211_v8 = vadd.f32 %v2210_v7, %v2209_v6  ;;  %v2212_v9 = vpop.f32.mrb[10].mxu0  ;;  %v3000_v10 = vmul.f32 0.5, %v742_v5 }
 0x15d   : > { %v2213_v11 = vpop.f32.mrb[11].mxu0 }
 0x15e   : > { %v583_v12 = vadd.f32 %v2211_v8, %v2987_v49  ;;  %v3003_v13 = vadd.f32 %v2213_v11, %v2212_v9  ;;  %v774_v14 = vmul.f32 %v3000_v10, %v3000_v10 }
 0x160   : > { %v711_v15 = vrot.slane %v583_v12, 4  ;;  %v793_v16 = vsel %vm789_vm0, %v774_v14, 0.0 }
 0x161   : > { %794 = vadd.xlane.f32.xlu0 %v793_v16 }
 0x162   : > { %v2215_v17 = vpop.f32.mrb[12].mxu0  ;;  %v743_v18 = vadd.f32 %v711_v15, %v583_v12 }
 0x163   : > { %v2216_v19 = vpop.f32.mrb[13].mxu0 }
 0x164   : > { %v2217_v20 = vadd.f32 %v2216_v19, %v2215_v17  ;;  %v2218_v21 = vpop.f32.mrb[14].mxu0  ;;  %v3008_v22 = vmul.f32 0.5, %v743_v18 }
 0x165   : > { %v2219_v23 = vpop.f32.mrb[15].mxu0 }
 0x166   : > { %v591_v24 = vadd.f32 %v2217_v20, %v2987_v49  ;;  %v3011_v25 = vadd.f32 %v2219_v23, %v2218_v21  ;;  %v775_v26 = vmul.f32 %v3008_v22, %v3008_v22 }
 0x168   : > { %v712_v27 = vrot.slane %v591_v24, 4  ;;  %v796_v28 = vsel %vm789_vm0, %v775_v26, 0.0 }
 0x169   : > { %797 = vadd.xlane.f32.xlu1 %v796_v28 }
 0x16a   : > { %v744_v29 = vadd.f32 %v712_v27, %v591_v24  ;;  %v2221_v30 = vpop.f32.mrb[16].mxu0 }
 0x16b   : > { %v2222_v31 = vpop.f32.mrb[17].mxu0 }
 0x16c   : > { %v2223_v32 = vadd.f32 %v2222_v31, %v2221_v30  ;;  %v2224_v33 = vpop.f32.mrb[18].mxu0  ;;  %v3016_v34 = vmul.f32 0.5, %v744_v29 }
 0x16d   : > { %v2225_v35 = vpop.f32.mrb[19].mxu0 }
 0x16e   : > { %v599_v36 = vadd.f32 %v2223_v32, %v2987_v49  ;;  %v3019_v37 = vadd.f32 %v2225_v35, %v2224_v33  ;;  %v776_v38 = vmul.f32 %v3016_v34, %v3016_v34 }
 0x170   : > { %v713_v39 = vrot.slane %v599_v36, 4  ;;  %v799_v40 = vsel %vm789_vm0, %v776_v38, 0.0 }
 0x171   : > { %800 = vadd.xlane.f32.xlu1 %v799_v40 }
 0x172   : > { %v745_v41 = vadd.f32 %v713_v39, %v599_v36  ;;  %v2227_v42 = vpop.f32.mrb[20].mxu0 }
 0x173   : > { %v2228_v43 = vpop.f32.mrb[21].mxu0 }
 0x174   : > { %v2229_v44 = vadd.f32 %v2228_v43, %v2227_v42  ;;  %v2230_v45 = vpop.f32.mrb[22].mxu0  ;;  %v3024_v46 = vmul.f32 0.5, %v745_v41 }
 0x175   : > { %v2231_v47 = vpop.f32.mrb[23].mxu0 }
 0x176   : > { %v607_v48 = vadd.f32 %v2229_v44, %v2987_v49  ;;  %v3027_v50 = vadd.f32 %v2231_v47, %v2230_v45  ;;  %v777_v51 = vmul.f32 %v3024_v46, %v3024_v46 }
 0x178   : > { %v714_v53 = vrot.slane %v607_v48, 4  ;;  %v802_v54 = vsel %vm789_vm0, %v777_v51, 0.0 }
 0x179   : > { %803 = vadd.xlane.f32.xlu0 %v802_v54 }
 0x17a   : > { %v746_v56 = vadd.f32 %v714_v53, %v607_v48  ;;  %v2233_v57 = vpop.f32.mrb[24].mxu0 }
 0x17b   : > { %v2234_v58 = vpop.f32.mrb[25].mxu0 }
 0x17c   : > { %v2235_v59 = vadd.f32 %v2234_v58, %v2233_v57  ;;  %v2236_v60 = vpop.f32.mrb[26].mxu0  ;;  %v3035_v61 = vmul.f32 0.5, %v746_v56 }
 0x17d   : > { %v2237_v63 = vpop.f32.mrb[27].mxu0 }
 0x17e   : > { %v615_v0 = vadd.f32 %v2235_v59, %v2987_v49  ;;  %v3038_v2 = vadd.f32 %v2237_v63, %v2236_v60  ;;  %v778_v3 = vmul.f32 %v3035_v61, %v3035_v61 }
 0x180   : > { %v715_v4 = vrot.slane %v615_v0, 4  ;;  %v805_v5 = vsel %vm789_vm0, %v778_v3, 0.0 }
 0x181   : > { %806 = vadd.xlane.f32.xlu1 %v805_v5 }
 0x182   : > { %v747_v6 = vadd.f32 %v715_v4, %v615_v0  ;;  %v2239_v7 = vpop.f32.mrb[28].mxu0 }
 0x183   : > { %v2240_v8 = vpop.f32.mrb[29].mxu0 }
 0x184   : > { %v2241_v9 = vadd.f32 %v2240_v8, %v2239_v7  ;;  %v2242_v11 = vpop.f32.mrb[30].mxu0  ;;  %v3043_v12 = vmul.f32 0.5, %v747_v6 }
 0x185   : > { %v2243_v14 = vpop.f32.mrb[31].mxu0 }
 0x186   : > { %v623_v15 = vadd.f32 %v2241_v9, %v2987_v49  ;;  %v3046_v16 = vadd.f32 %v2243_v14, %v2242_v11  ;;  %v779_v17 = vmul.f32 %v3043_v12, %v3043_v12 }
 0x188   : > { %v716_v18 = vrot.slane %v623_v15, 4  ;;  %v808_v19 = vsel %vm789_vm0, %v779_v17, 0.0 }
 0x189   : > { %809 = vadd.xlane.f32.xlu0 %v808_v19 }
 0x18a   : > { %v748_v20 = vadd.f32 %v716_v18, %v623_v15  ;;  %v2245_v21 = vpop.f32.mrb[32].mxu0 }
 0x18b   : > { %v2246_v23 = vpop.f32.mrb[33].mxu0 }
 0x18c   : > { %v2247_v24 = vadd.f32 %v2246_v23, %v2245_v21  ;;  %v2248_v26 = vpop.f32.mrb[34].mxu0  ;;  %v3051_v27 = vmul.f32 0.5, %v748_v20 }
 0x18d   : > { %v2249_v28 = vpop.f32.mrb[35].mxu0 }
 0x18e   : > { %v631_v29 = vadd.f32 %v2247_v24, %v2987_v49  ;;  %v3054_v30 = vadd.f32 %v2249_v28, %v2248_v26  ;;  %v780_v31 = vmul.f32 %v3051_v27, %v3051_v27 }
 0x190   : > { %v717_v32 = vrot.slane %v631_v29, 4  ;;  %v811_v33 = vsel %vm789_vm0, %v780_v31, 0.0 }
 0x191   : > { %812 = vadd.xlane.f32.xlu1 %v811_v33 }
 0x192   : > { %v749_v35 = vadd.f32 %v717_v32, %v631_v29  ;;  %v2251_v36 = vpop.f32.mrb[36].mxu0 }
 0x193   : > { %v2252_v38 = vpop.f32.mrb[37].mxu0 }
 0x194   : > { %v2253_v39 = vadd.f32 %v2252_v38, %v2251_v36  ;;  %v2254_v40 = vpop.f32.mrb[38].mxu0  ;;  %v3059_v41 = vmul.f32 0.5, %v749_v35 }
 0x195   : > { %v2255_v42 = vpop.f32.mrb[39].mxu0 }
 0x196   : > { %v639_v43 = vadd.f32 %v2253_v39, %v2987_v49  ;;  %v3062_v44 = vadd.f32 %v2255_v42, %v2254_v40  ;;  %v781_v45 = vmul.f32 %v3059_v41, %v3059_v41 }
 0x198   : > { %v718_v47 = vrot.slane %v639_v43, 4  ;;  %v814_v48 = vsel %vm789_vm0, %v781_v45, 0.0 }
 0x199   : > { %815 = vadd.xlane.f32.xlu0 %v814_v48 }
 0x19a   : > { %v750_v51 = vadd.f32 %v718_v47, %v639_v43  ;;  %v2257_v53 = vpop.f32.mrb[40].mxu0 }
 0x19b   : > { %v2258_v54 = vpop.f32.mrb[41].mxu0 }
 0x19c   : > { %v2259_v56 = vadd.f32 %v2258_v54, %v2257_v53  ;;  %v2260_v57 = vpop.f32.mrb[42].mxu0  ;;  %v3067_v58 = vmul.f32 0.5, %v750_v51 }
 0x19d   : > { %v2261_v59 = vpop.f32.mrb[43].mxu0 }
 0x19e   : > { %v647_v60 = vadd.f32 %v2259_v56, %v2987_v49  ;;  %v3070_v63 = vadd.f32 %v2261_v59, %v2260_v57  ;;  %v782_v0 = vmul.f32 %v3067_v58, %v3067_v58 }
 0x1a0   : > { %v719_v3 = vrot.slane %v647_v60, 4  ;;  %v817_v4 = vsel %vm789_vm0, %v782_v0, 0.0 }
 0x1a1   : > { %818 = vadd.xlane.f32.xlu1 %v817_v4 }
 0x1a2   : > { %v751_v5 = vadd.f32 %v719_v3, %v647_v60  ;;  %v2263_v6 = vpop.f32.mrb[44].mxu0 }
 0x1a3   : > { %v2264_v7 = vpop.f32.mrb[45].mxu0 }
 0x1a4   : > { %v2265_v8 = vadd.f32 %v2264_v7, %v2263_v6  ;;  %v2266_v9 = vpop.f32.mrb[46].mxu0  ;;  %v3075_v11 = vmul.f32 0.5, %v751_v5 }
 0x1a5   : > { %v2267_v14 = vpop.f32.mrb[47].mxu0 }
 0x1a6   : > { %v655_v15 = vadd.f32 %v2265_v8, %v2987_v49  ;;  %v3078_v17 = vadd.f32 %v2267_v14, %v2266_v9  ;;  %v783_v18 = vmul.f32 %v3075_v11, %v3075_v11 }
 0x1a8   : > { %v720_v19 = vrot.slane %v655_v15, 4  ;;  %v820_v20 = vsel %vm789_vm0, %v783_v18, 0.0 }
 0x1a9   : > { %821 = vadd.xlane.f32.xlu0 %v820_v20 }
 0x1aa   : > { %v752_v21 = vadd.f32 %v720_v19, %v655_v15  ;;  %v2269_v23 = vpop.f32.mrb[48].mxu0 }
 0x1ab   : > { %v2270_v24 = vpop.f32.mrb[49].mxu0 }
 0x1ac   : > { %v2271_v26 = vadd.f32 %v2270_v24, %v2269_v23  ;;  %v2272_v28 = vpop.f32.mrb[50].mxu0  ;;  %v3083_v29 = vmul.f32 0.5, %v752_v21 }
 0x1ad   : > { %v2273_v31 = vpop.f32.mrb[51].mxu0 }
 0x1ae   : > { %v663_v32 = vadd.f32 %v2271_v26, %v2987_v49  ;;  %v3086_v33 = vadd.f32 %v2273_v31, %v2272_v28  ;;  %v784_v35 = vmul.f32 %v3083_v29, %v3083_v29 }
 0x1b0   : > { %v721_v36 = vrot.slane %v663_v32, 4  ;;  %v823_v38 = vsel %vm789_vm0, %v784_v35, 0.0 }
 0x1b1   : > { %824 = vadd.xlane.f32.xlu1 %v823_v38 }
 0x1b2   : > { %v753_v39 = vadd.f32 %v721_v36, %v663_v32  ;;  %v2275_v40 = vpop.f32.mrb[52].mxu0 }
 0x1b3   : > { %v2276_v42 = vpop.f32.mrb[53].mxu0 }
 0x1b4   : > { %v2277_v43 = vadd.f32 %v2276_v42, %v2275_v40  ;;  %v2278_v45 = vpop.f32.mrb[54].mxu0  ;;  %v3091_v47 = vmul.f32 0.5, %v753_v39 }
 0x1b5   : > { %v2279_v48 = vpop.f32.mrb[55].mxu0 }
 0x1b6   : > { %v671_v51 = vadd.f32 %v2277_v43, %v2987_v49  ;;  %v3094_v53 = vadd.f32 %v2279_v48, %v2278_v45  ;;  %v785_v54 = vmul.f32 %v3091_v47, %v3091_v47 }
 0x1b8   : > { %v722_v56 = vrot.slane %v671_v51, 4  ;;  %v826_v57 = vsel %vm789_vm0, %v785_v54, 0.0 }
 0x1b9   : > { %827 = vadd.xlane.f32.xlu0 %v826_v57 }
 0x1ba   : > { %v754_v59 = vadd.f32 %v722_v56, %v671_v51  ;;  %v2281_v60 = vpop.f32.mrb[56].mxu0 }
 0x1bb   : > { %v2282_v0 = vpop.f32.mrb[57].mxu0 }
 0x1bc   : > { %v2283_v3 = vadd.f32 %v2282_v0, %v2281_v60  ;;  %v2284_v4 = vpop.f32.mrb[58].mxu0  ;;  %v3099_v5 = vmul.f32 0.5, %v754_v59  ;;  %v570_v0 = vadd.f32 %v2990_v55, %v2987_v49 }
 0x1bd   : > { %v2285_v6 = vpop.f32.mrb[59].mxu0 }
 0x1be   : > { %v679_v7 = vadd.f32 %v2283_v3, %v2987_v49  ;;  %v3102_v8 = vadd.f32 %v2285_v6, %v2284_v4  ;;  %v786_v9 = vmul.f32 %v3099_v5, %v3099_v5  ;;  %v886_v6 = vpack.c.bf16 %v570_v0, %v570_v0 }
 0x1c0   : > { %v723_v14 = vrot.slane %v679_v7, 4  ;;  %v829_v15 = vsel %vm789_vm0, %v786_v9, 0.0 }
 0x1c1   : > { %830 = vadd.xlane.f32.xlu1 %v829_v15 }
 0x1c2   : > { %v755_v18 = vadd.f32 %v723_v14, %v679_v7  ;;  %v2287_v19 = vpop.f32.mrb[60].mxu0 }
 0x1c3   : > { %v2288_v20 = vpop.f32.mrb[61].mxu0 }
 0x1c4   : > { %v2289_v21 = vadd.f32 %v2288_v20, %v2287_v19  ;;  %v2290_v23 = vpop.f32.mrb[62].mxu0  ;;  %v3107_v24 = vmul.f32 0.5, %v755_v18 }
 0x1c5   : > { %v2291_v26 = vpop.f32.mrb[63].mxu0 }
 0x1c6   : > { %v687_v28 = vadd.f32 %v2289_v21, %v2987_v49  ;;  %v3110_v31 = vadd.f32 %v2291_v26, %v2290_v23  ;;  %v787_v32 = vmul.f32 %v3107_v24, %v3107_v24  ;;  %v586_v21 = vadd.f32 %v3003_v13, %v2987_v49 }
 0x1c8   : > { %v724_v35 = vrot.slane %v687_v28, 4  ;;  %v832_v36 = vsel %vm789_vm0, %v787_v32, 0.0  ;;  %v888_v26 = vpack.c.bf16 %v586_v21, %v586_v21 }
 0x1c9   : > { %833 = vadd.xlane.f32.xlu0 %v832_v36 }
 0x1ca   : > { %v756_v38 = vadd.f32 %v724_v35, %v687_v28  ;;  %v594_v35 = vadd.f32 %v3011_v25, %v2987_v49 }
 0x1cc   : > { %v3115_v39 = vmul.f32 0.5, %v756_v38  ;;  %v889_v38 = vpack.c.bf16 %v594_v35, %v594_v35  ;;  %v650_v35 = vadd.f32 %v3070_v63, %v2987_v49 }
 0x1ce   : > { %v788_v40 = vmul.f32 %v3115_v39, %v3115_v39 }
 0x1d0   : > { %v835_v42 = vsel %vm789_vm0, %v788_v40, 0.0 }
 0x1d1   : > { %836 = vadd.xlane.f32.xlu1 %v835_v42 }
 0x1e6   : > { %v792_v43 = vpop.xlane.xlu0 %791 }
 0x1e7   : > { %v838_v45 = vmax.f32 %v792_v43, 1e-24  ;;  %v602_v43 = vadd.f32 %v3019_v37, %v2987_v49 }
 0x1e9   : > { %2550 = vrsqrt.f32 %v838_v45 }
 0x1ee   : > { %v795_v48 = vpop.xlane.xlu0 %794 }
 0x1ef   : > { %v839_v51 = vmax.f32 %v795_v48, 1e-24  ;;  %v890_v48 = vpack.c.bf16 %v602_v43, %v602_v43 }
 0x1f1   : > { %2552 = vrsqrt.f32 %v839_v51 }
 0x1f3   : > { %v2551_v54 = vpop.eup %2550 }
 0x1f4   : > { %v870_v56 = vmul.f32 %v2551_v54, %v2992_v62  ;;  %v578_v62 = vadd.f32 %v2995_v1, %v2987_v49 }
 0x1f6   : > { %v798_v57 = vpop.xlane.xlu1 %797  ;;  %v902_v59 = vpack.c.bf16 %v870_v56, %v870_v56  ;;  %v887_v18 = vpack.c.bf16 %v578_v62, %v578_v62  ;;  %v610_v56 = vadd.f32 %v3027_v50, %v2987_v49 }
 0x1f7   : > { %v840_v60 = vmax.f32 %v798_v57, 1e-24 }
 0x1f8   : > { %2326 = vmatpush3.bf16.xpose.msra.mxu1 %v902_v59  ;;  %v891_v59 = vpack.c.bf16 %v610_v56, %v610_v56 }
 0x1f9   : > { %2554 = vrsqrt.f32 %v840_v60  ;;  %2331 = vmatprep.subr.bf16.mxu1 %v2782_v52 }
 0x1fb   : > { %v2553_v3 = vpop.eup %2552 }
 0x1fc   : > { %v871_v4 = vmul.f32 %v2553_v3, %v3000_v10  ;;  %v618_v3 = vadd.f32 %v3038_v2, %v2987_v49 }
 0x1fe   : > { %v801_v7 = vpop.xlane.xlu1 %800  ;;  %v903_v9 = vpack.c.bf16 %v871_v4, %v871_v4 }
 0x1ff   : > { %v841_v14 = vmax.f32 %v801_v7, 1e-24  ;;  %2328 = vmatmul.mubr.bf16.vlgmr.msra.gmra.mrb[0].mxu1 %v886_v6  ;;  %v892_v6 = vpack.c.bf16 %v618_v3, %v618_v3 }
 0x200   : > { %2332 = vmatpush3.bf16.xpose.msra.mxu1 %v903_v9  ;;  %2333 = vmatprep.mubr.msk.bf16.mxu1 %vm2783_vm1, %v2782_v52 }
 0x201   : > { %2556 = vrsqrt.f32 %v841_v14  ;;  %2337 = vmatprep.subr.bf16.mxu1 %v2782_v52  ;;  %v626_v14 = vadd.f32 %v3046_v16, %v2987_v49 }
 0x203   : > { %v2555_v55 = vpop.eup %2554 }
 0x204   : > { %v872_v15 = vmul.f32 %v2555_v55, %v3008_v22  ;;  %v893_v55 = vpack.c.bf16 %v626_v14, %v626_v14 }
 0x206   : > { %v804_v10 = vpop.xlane.xlu0 %803  ;;  %v904_v19 = vpack.c.bf16 %v872_v15, %v872_v15 }
 0x207   : > { %v842_v20 = vmax.f32 %v804_v10, 1e-24  ;;  %2334 = vmatmul.mubr.bf16.vlgmr.msra.gmra.mrb[4].mxu1 %v887_v18  ;;  %v634_v10 = vadd.f32 %v3054_v30, %v2987_v49 }
 0x208   : > { %2338 = vmatpush3.bf16.xpose.msra.mxu1 %v904_v19  ;;  %2339 = vmatprep.mubr.msk.bf16.mxu1 %vm2783_vm1, %v2782_v52 }
 0x209   : > { %2558 = vrsqrt.f32 %v842_v20  ;;  %2343 = vmatprep.subr.bf16.mxu1 %v2782_v52  ;;  %v894_v20 = vpack.c.bf16 %v634_v10, %v634_v10 }
 0x20b   : > { %v2557_v1 = vpop.eup %2556 }
 0x20c   : > { %v873_v23 = vmul.f32 %v2557_v1, %v3016_v34 }
 0x20e   : > { %v807_v22 = vpop.xlane.xlu1 %806  ;;  %v905_v28 = vpack.c.bf16 %v873_v23, %v873_v23  ;;  %v642_v23 = vadd.f32 %v3062_v44, %v2987_v49 }
 0x20f   : > { %v843_v32 = vmax.f32 %v807_v22, 1e-24  ;;  %2340 = vmatmul.mubr.bf16.vlgmr.msra.gmra.mrb[8].mxu1 %v888_v26 }
 0x210   : > { %2344 = vmatpush3.bf16.xpose.msra.mxu1 %v905_v28  ;;  %2345 = vmatprep.mubr.msk.bf16.mxu1 %vm2783_vm1, %v2782_v52  ;;  %v895_v22 = vpack.c.bf16 %v642_v23, %v642_v23 }
 0x211   : > { %2560 = vrsqrt.f32 %v843_v32  ;;  %2349 = vmatprep.subr.bf16.mxu1 %v2782_v52 }
 0x213   : > { %v2559_v13 = vpop.eup %2558 }
 0x214   : > { %v874_v36 = vmul.f32 %v2559_v13, %v3024_v46 }
 0x216   : > { %v810_v34 = vpop.xlane.xlu0 %809  ;;  %v906_v40 = vpack.c.bf16 %v874_v36, %v874_v36  ;;  %v896_v36 = vpack.c.bf16 %v650_v35, %v650_v35 }
 0x217   : > { %v844_v42 = vmax.f32 %v810_v34, 1e-24  ;;  %2346 = vmatmul.mubr.bf16.vlgmr.msra.gmra.mrb[12].mxu1 %v889_v38 }
 0x218   : > { %2350 = vmatpush3.bf16.xpose.msra.mxu1 %v906_v40  ;;  %2351 = vmatprep.mubr.msk.bf16.mxu1 %vm2783_vm1, %v2782_v52  ;;  %v658_v40 = vadd.f32 %v3078_v17, %v2987_v49 }
 0x219   : > { %2562 = vrsqrt.f32 %v844_v42  ;;  %2355 = vmatprep.subr.bf16.mxu1 %v2782_v52 }
 0x21a   : > { %v897_v43 = vpack.c.bf16 %v658_v40, %v658_v40 }
 0x21b   : > { %v2561_v25 = vpop.eup %2560 }
 0x21c   : > { %v875_v45 = vmul.f32 %v2561_v25, %v3035_v61 }
 0x21e   : > { %v813_v46 = vpop.xlane.xlu1 %812  ;;  %v907_v51 = vpack.c.bf16 %v875_v45, %v875_v45 }
 0x21f   : > { %v845_v54 = vmax.f32 %v813_v46, 1e-24  ;;  %2352 = vmatmul.mubr.bf16.vlgmr.msra.gmra.mrb[16].mxu1 %v890_v48  ;;  %v666_v48 = vadd.f32 %v3086_v33, %v2987_v49 }
 0x220   : > { %2356 = vmatpush3.bf16.xpose.msra.mxu1 %v907_v51  ;;  %2357 = vmatprep.mubr.msk.bf16.mxu1 %vm2783_vm1, %v2782_v52 }
 0x221   : > { %2564 = vrsqrt.f32 %v845_v54  ;;  %2361 = vmatprep.subr.bf16.mxu1 %v2782_v52  ;;  %v898_v51 = vpack.c.bf16 %v666_v48, %v666_v48 }
 0x223   : > { %v2563_v37 = vpop.eup %2562 }
 0x224   : > { %v876_v57 = vmul.f32 %v2563_v37, %v3043_v12  ;;  %v674_v37 = vadd.f32 %v3094_v53, %v2987_v49 }
 0x226   : > { %v816_v61 = vpop.xlane.xlu0 %815  ;;  %v908_v60 = vpack.c.bf16 %v876_v57, %v876_v57 }
 0x227   : > { %v846_v0 = vmax.f32 %v816_v61, 1e-24  ;;  %2358 = vmatmul.mubr.bf16.vlgmr.msra.gmra.mrb[20].mxu1 %v891_v59  ;;  %v899_v59 = vpack.c.bf16 %v674_v37, %v674_v37  ;;  %v682_v61 = vadd.f32 %v3102_v8, %v2987_v49 }
 0x228   : > { %2362 = vmatpush3.bf16.xpose.msra.mxu1 %v908_v60  ;;  %2363 = vmatprep.mubr.msk.bf16.mxu1 %vm2783_vm1, %v2782_v52 }
 0x229   : > { %2566 = vrsqrt.f32 %v846_v0  ;;  %2367 = vmatprep.subr.bf16.mxu1 %v2782_v52  ;;  %v900_v0 = vpack.c.bf16 %v682_v61, %v682_v61 }
 0x22b   : > { %v2565_v50 = vpop.eup %2564 }
 0x22c   : > { %v877_v4 = vmul.f32 %v2565_v50, %v3051_v27 }
 0x22e   : > { %v819_v12 = vpop.xlane.xlu1 %818  ;;  %v909_v7 = vpack.c.bf16 %v877_v4, %v877_v4 }
 0x22f   : > { %v847_v9 = vmax.f32 %v819_v12, 1e-24  ;;  %2364 = vmatmul.mubr.bf16.vlgmr.msra.gmra.mrb[24].mxu1 %v892_v6 }
 0x230   : > { %2368 = vmatpush3.bf16.xpose.msra.mxu1 %v909_v7  ;;  %2369 = vmatprep.mubr.msk.bf16.mxu1 %vm2783_vm1, %v2782_v52 }
 0x231   : > { %2568 = vrsqrt.f32 %v847_v9  ;;  %2373 = vmatprep.subr.bf16.mxu1 %v2782_v52 }
 0x233   : > { %v2567_v2 = vpop.eup %2566 }
 0x234   : > { %v878_v62 = vmul.f32 %v2567_v2, %v3059_v41 }
 0x236   : > { %v822_v27 = vpop.xlane.xlu0 %821  ;;  %v910_v15 = vpack.c.bf16 %v878_v62, %v878_v62 }
 0x237   : > { %v848_v18 = vmax.f32 %v822_v27, 1e-24  ;;  %2370 = vmatmul.mubr.bf16.vlgmr.msra.gmra.mrb[28].mxu1 %v893_v55 }
 0x238   : > { %2374 = vmatpush3.bf16.xpose.msra.mxu1 %v910_v15  ;;  %2375 = vmatprep.mubr.msk.bf16.mxu1 %vm2783_vm1, %v2782_v52 }
 0x239   : > { %2570 = vrsqrt.f32 %v848_v18  ;;  %2379 = vmatprep.subr.bf16.mxu1 %v2782_v52 }
 0x23b   : > { %v2569_v16 = vpop.eup %2568 }
 0x23c   : > { %v879_v19 = vmul.f32 %v2569_v16, %v3067_v58 }
 0x23e   : > { %v825_v41 = vpop.xlane.xlu1 %824  ;;  %v911_v21 = vpack.c.bf16 %v879_v19, %v879_v19 }
 0x23f   : > { %v849_v1 = vmax.f32 %v825_v41, 1e-24  ;;  %2376 = vmatmul.mubr.bf16.vlgmr.msra.gmra.mrb[32].mxu1 %v894_v20 }
 0x240   : > { %2380 = vmatpush3.bf16.xpose.msra.mxu1 %v911_v21  ;;  %2381 = vmatprep.mubr.msk.bf16.mxu1 %vm2783_vm1, %v2782_v52 }
 0x241   : > { %2572 = vrsqrt.f32 %v849_v1  ;;  %2385 = vmatprep.subr.bf16.mxu1 %v2782_v52 }
 0x243   : > { %v2571_v30 = vpop.eup %2570 }
 0x244   : > { %v880_v26 = vmul.f32 %v2571_v30, %v3075_v11 }
 0x246   : > { %v828_v58 = vpop.xlane.xlu0 %827  ;;  %v912_v28 = vpack.c.bf16 %v880_v26, %v880_v26 }
 0x247   : > { %v850_v32 = vmax.f32 %v828_v58, 1e-24  ;;  %2382 = vmatmul.mubr.bf16.vlgmr.msra.gmra.mrb[36].mxu1 %v895_v22 }
 0x248   : > { %2386 = vmatpush3.bf16.xpose.msra.mxu1 %v912_v28  ;;  %2387 = vmatprep.mubr.msk.bf16.mxu1 %vm2783_vm1, %v2782_v52 }
 0x249   : > { %2574 = vrsqrt.f32 %v850_v32  ;;  %2391 = vmatprep.subr.bf16.mxu1 %v2782_v52 }
 0x24b   : > { %v2573_v44 = vpop.eup %2572 }
 0x24c   : > { %v881_v13 = vmul.f32 %v2573_v44, %v3083_v29 }
 0x24e   : > { %v831_v11 = vpop.xlane.xlu1 %830  ;;  %v913_v38 = vpack.c.bf16 %v881_v13, %v881_v13 }
 0x24f   : > { %v851_v34 = vmax.f32 %v831_v11, 1e-24  ;;  %2388 = vmatmul.mubr.bf16.vlgmr.msra.gmra.mrb[40].mxu1 %v896_v36 }
 0x250   : > { %2392 = vmatpush3.bf16.xpose.msra.mxu1 %v913_v38  ;;  %2393 = vmatprep.mubr.msk.bf16.mxu1 %vm2783_vm1, %v2782_v52 }
 0x251   : > { %2576 = vrsqrt.f32 %v851_v34  ;;  %2397 = vmatprep.subr.bf16.mxu1 %v2782_v52 }
 0x253   : > { %v2575_v63 = vpop.eup %2574 }
 0x254   : > { %v882_v42 = vmul.f32 %v2575_v63, %v3091_v47 }
 0x256   : > { %v834_v29 = vpop.xlane.xlu0 %833  ;;  %v914_v25 = vpack.c.bf16 %v882_v42, %v882_v42 }
 0x257   : > { %v852_v45 = vmax.f32 %v834_v29, 1e-24  ;;  %2394 = vmatmul.mubr.bf16.vlgmr.msra.gmra.mrb[44].mxu1 %v897_v43 }
 0x258   : > { %2398 = vmatpush3.bf16.xpose.msra.mxu1 %v914_v25  ;;  %2399 = vmatprep.mubr.msk.bf16.mxu1 %vm2783_vm1, %v2782_v52 }
 0x259   : > { %2578 = vrsqrt.f32 %v852_v45  ;;  %2403 = vmatprep.subr.bf16.mxu1 %v2782_v52  ;;  %v1574_v45 = vlaneseq }
 0x25b   : > { %v2577_v17 = vpop.eup %2576 }
 0x25c   : > { %v883_v46 = vmul.f32 %v2577_v17, %v3099_v5 }
 0x25e   : > { %v837_v47 = vpop.xlane.xlu1 %836  ;;  %v915_v54 = vpack.c.bf16 %v883_v46, %v883_v46 }
 0x25f   : > { %v853_v56 = vmax.f32 %v837_v47, 1e-24  ;;  %2400 = vmatmul.mubr.bf16.vlgmr.msra.gmra.mrb[48].mxu1 %v898_v51  ;;  %v1575_v51 = vshrl.u32 %v1574_v45, 7 }
 0x260   : > { %2404 = vmatpush3.bf16.xpose.msra.mxu1 %v915_v54  ;;  %2405 = vmatprep.mubr.msk.bf16.mxu1 %vm2783_vm1, %v2782_v52 }
 0x261   : > { %2580 = vrsqrt.f32 %v853_v56  ;;  %2409 = vmatprep.subr.bf16.mxu1 %v2782_v52 }
 0x263   : > { %v2579_v33 = vpop.eup %2578 }
 0x264   : > { %v884_v57 = vmul.f32 %v2579_v33, %v3107_v24  ;;  %v690_v24 = vadd.f32 %v3110_v31, %v2987_v49  ;;  %v1577_v33 = vand.u32 127, %v1574_v45 }
 0x266   : > { %v916_v5 = vpack.c.bf16 %v884_v57, %v884_v57  ;;  %v901_v50 = vpack.c.bf16 %v690_v24, %v690_v24  ;;  %v1582_v57 = vand.u32 3, %v1575_v51 }
 0x267   : > { %2406 = vmatmul.mubr.bf16.vlgmr.msra.gmra.mrb[52].mxu1 %v899_v59 }
 0x268   : > { %2410 = vmatpush3.bf16.xpose.msra.mxu1 %v916_v5  ;;  %2411 = vmatprep.mubr.msk.bf16.mxu1 %vm2783_vm1, %v2782_v52  ;;  %vm3249_vm3 = vcmp.eq.s32.totalorder %v1577_v33, %v1582_v57 }
 0x269   : > { %2415 = vmatprep.subr.bf16.mxu1 %v2782_v52 }
 0x26b   : > { %v2581_v60 = vpop.eup %2580 }
 0x26c   : > { %v885_v53 = vmul.f32 %v2581_v60, %v3115_v39 }
 0x26e   : > { %v917_v3 = vpack.c.bf16 %v885_v53, %v885_v53 }
 0x26f   : > { %2412 = vmatmul.mubr.bf16.vlgmr.msra.gmra.mrb[56].mxu1 %v900_v0 }
 0x270   : > { %2416 = vmatpush3.bf16.xpose.msra.mxu1 %v917_v3  ;;  %2417 = vmatprep.mubr.msk.bf16.mxu1 %vm2783_vm1, %v2782_v52 }
 0x277   : > { %2418 = vmatmul.mubr.bf16.vlgmr.msra.gmra.mrb[60].mxu1 %v901_v50 }
 0x2d2   : > { %v952_v4 = vpop.f32.mrb[0].mxu1 }
 0x2d3   : > { %v3213_v8 = vmul.f32 2.0, %v952_v4  ;;  %v2329_v6 = vpop.f32.mrb[1].mxu1 }
 0x2d4   : > { %v955_v12 = vpop.f32.mrb[2].mxu1 }
 0x2d5   : > { %v2330_v7 = vpop.f32.mrb[3].mxu1  ;;  %v1592_v39 = vsel %vm1591_vm2, %v3213_v8, -inf  ;;  %v1784_v6 = vsel %vm3249_vm3, %v3213_v8, 0.0 }
 0x2d6   : > { %1593 = vmax.xlane.f32.xlu0 %v1592_v39  ;;  %v1800_v12 = vsel %vm1591_vm2, %v1784_v6, 0.0 }
 0x2da   : > { %v992_v9 = vpop.f32.mrb[4].mxu1 }
 0x2db   : > { %v3217_v14 = vmul.f32 2.0, %v992_v9  ;;  %v2335_v52 = vpop.f32.mrb[5].mxu1 }
 0x2dc   : > { %v995_v2 = vpop.f32.mrb[6].mxu1 }
 0x2dd   : > { %v2336_v62 = vpop.f32.mrb[7].mxu1  ;;  %v1595_v49 = vsel %vm1591_vm2, %v3217_v14, -inf  ;;  %v1785_v51 = vsel %vm3249_vm3, %v3217_v14, 0.0 }
 0x2de   : > { %1596 = vmax.xlane.f32.xlu1 %v1595_v49 }
 0x2e2   : > { %v1032_v31 = vpop.f32.mrb[8].mxu1 }
 0x2e3   : > { %v3221_v55 = vmul.f32 2.0, %v1032_v31  ;;  %v2341_v27 = vpop.f32.mrb[9].mxu1 }
 0x2e4   : > { %v1035_v15 = vpop.f32.mrb[10].mxu1 }
 0x2e5   : > { %v2342_v18 = vpop.f32.mrb[11].mxu1  ;;  %v1598_v10 = vsel %vm1591_vm2, %v3221_v55, -inf }
 0x2e6   : > { %1599 = vmax.xlane.f32.xlu0 %v1598_v10 }
 0x2ea   : > { %v1072_v16 = vpop.f32.mrb[12].mxu1 }
 0x2eb   : > { %v3225_v19 = vmul.f32 2.0, %v1072_v16  ;;  %v2347_v20 = vpop.f32.mrb[13].mxu1 }
 0x2ec   : > { %v1075_v41 = vpop.f32.mrb[14].mxu1 }
 0x2ed   : > { %v2348_v21 = vpop.f32.mrb[15].mxu1  ;;  %v1601_v1 = vsel %vm1591_vm2, %v3225_v19, -inf }
 0x2ee   : > { %1602 = vmax.xlane.f32.xlu0 %v1601_v1 }
 0x2f2   : > { %v1112_v23 = vpop.f32.mrb[16].mxu1 }
 0x2f3   : > { %v3229_v30 = vmul.f32 2.0, %v1112_v23  ;;  %v2353_v26 = vpop.f32.mrb[17].mxu1 }
 0x2f4   : > { %v1115_v22 = vpop.f32.mrb[18].mxu1 }
 0x2f5   : > { %v2354_v58 = vpop.f32.mrb[19].mxu1  ;;  %v1604_v28 = vsel %vm1591_vm2, %v3229_v30, -inf }
 0x2f6   : > { %1605 = vmax.xlane.f32.xlu0 %v1604_v28 }
 0x2fa   : > { %v1152_v32 = vpop.f32.mrb[20].mxu1 }
 0x2fb   : > { %v3233_v35 = vmul.f32 2.0, %v1152_v32  ;;  %v2359_v44 = vpop.f32.mrb[21].mxu1 }
 0x2fc   : > { %v1155_v13 = vpop.f32.mrb[22].mxu1 }
 0x2fd   : > { %v2360_v36 = vpop.f32.mrb[23].mxu1  ;;  %v1607_v11 = vsel %vm1591_vm2, %v3233_v35, -inf }
 0x2fe   : > { %1608 = vmax.xlane.f32.xlu0 %v1607_v11 }
 0x302   : > { %v1192_v38 = vpop.f32.mrb[24].mxu1 }
 0x303   : > { %v2365_v34 = vpop.f32.mrb[25].mxu1  ;;  %v3239_v54 = vmul.f32 2.0, %v1192_v38 }
 0x304   : > { %v1195_v40 = vpop.f32.mrb[26].mxu1 }
 0x305   : > { %v2366_v63 = vpop.f32.mrb[27].mxu1  ;;  %v1610_v5 = vsel %vm1591_vm2, %v3239_v54, -inf }
 0x30a   : > { %v1232_v42 = vpop.f32.mrb[28].mxu1 }
 0x30b   : > { %v2371_v43 = vpop.f32.mrb[29].mxu1  ;;  %v3243_v59 = vmul.f32 2.0, %v1232_v42 }
 0x30c   : > { %v1235_v29 = vpop.f32.mrb[30].mxu1 }
 0x30d   : > { %v2372_v25 = vpop.f32.mrb[31].mxu1  ;;  %v1613_v50 = vsel %vm1591_vm2, %v3243_v59, -inf }
 0x312   : > { %v1272_v48 = vpop.f32.mrb[32].mxu1 }
 0x313   : > { %v3237_v17 = vmul.f32 2.0, %v1272_v48  ;;  %v2377_v46 = vpop.f32.mrb[33].mxu1 }
 0x314   : > { %v1275_v47 = vpop.f32.mrb[34].mxu1 }
 0x315   : > { %v2378_v56 = vpop.f32.mrb[35].mxu1  ;;  %v1616_v37 = vsel %vm1591_vm2, %v3237_v17, -inf  ;;  %v1792_v39 = vsel %vm3249_vm3, %v3237_v17, 0.0  ;;  %v1803_v47 = vsel %vm1591_vm2, %v1785_v51, 0.0 }
 0x316   : > { %1617 = vmax.xlane.f32.xlu0 %v1616_v37  ;;  %v1824_v49 = vsel %vm1591_vm2, %v1792_v39, 0.0 }
 0x31a   : > { %1611 = vmax.xlane.f32.xlu0 %v1610_v5  ;;  %v1312_v61 = vpop.f32.mrb[36].mxu1 }
 0x31b   : > { %v3247_v60 = vmul.f32 2.0, %v1312_v61  ;;  %v2383_v53 = vpop.f32.mrb[37].mxu1 }
 0x31c   : > { %v1315_v3 = vpop.f32.mrb[38].mxu1 }
 0x31d   : > { %v2384_v24 = vpop.f32.mrb[39].mxu1  ;;  %v1619_v4 = vsel %vm1591_vm2, %v3247_v60, -inf  ;;  %v1793_v56 = vsel %vm3249_vm3, %v3247_v60, 0.0 }
 0x31e   : > { %1614 = vmax.xlane.f32.xlu0 %v1613_v50  ;;  %1620 = vmax.xlane.f32.xlu1 %v1619_v4  ;;  %v1827_v37 = vsel %vm1591_vm2, %v1793_v56, 0.0 }
 0x322   : > { %1801 = vadd.xlane.f32.xlu0 %v1800_v12  ;;  %v1352_v7 = vpop.f32.mrb[40].mxu1 }
 0x323   : > { %v3264_v9 = vmul.f32 2.0, %v1352_v7  ;;  %v2389_v52 = vpop.f32.mrb[41].mxu1 }
 0x324   : > { %v1355_v2 = vpop.f32.mrb[42].mxu1 }
 0x325   : > { %v2390_v62 = vpop.f32.mrb[43].mxu1  ;;  %v1622_v31 = vsel %vm1591_vm2, %v3264_v9, -inf  ;;  %v1794_v52 = vsel %vm3249_vm3, %v3264_v9, 0.0 }
 0x326   : > { %1825 = vadd.xlane.f32.xlu0 %v1824_v49  ;;  %1623 = vmax.xlane.f32.xlu1 %v1622_v31  ;;  %v1830_v62 = vsel %vm1591_vm2, %v1794_v52, 0.0 }
 0x32a   : > { %v1392_v27 = vpop.f32.mrb[44].mxu1 }
 0x32b   : > { %v3269_v15 = vmul.f32 2.0, %v1392_v27  ;;  %v2395_v18 = vpop.f32.mrb[45].mxu1 }
 0x32c   : > { %v1395_v10 = vpop.f32.mrb[46].mxu1 }
 0x32d   : > { %v2396_v16 = vpop.f32.mrb[47].mxu1  ;;  %v1625_v20 = vsel %vm1591_vm2, %v3269_v15, -inf  ;;  %v1795_v49 = vsel %vm3249_vm3, %v3269_v15, 0.0 }
 0x32e   : > { %1626 = vmax.xlane.f32.xlu1 %v1625_v20  ;;  %v1833_v18 = vsel %vm1591_vm2, %v1795_v49, 0.0 }
 0x332   : > { %v1432_v41 = vpop.f32.mrb[48].mxu1 }
 0x333   : > { %v3273_v21 = vmul.f32 2.0, %v1432_v41  ;;  %v2401_v1 = vpop.f32.mrb[49].mxu1 }
 0x334   : > { %v1435_v23 = vpop.f32.mrb[50].mxu1 }
 0x335   : > { %v2402_v26 = vpop.f32.mrb[51].mxu1  ;;  %v1628_v22 = vsel %vm1591_vm2, %v3273_v21, -inf }
 0x336   : > { %1629 = vmax.xlane.f32.xlu1 %v1628_v22 }
 0x33a   : > { %v1472_v58 = vpop.f32.mrb[52].mxu1 }
 0x33b   : > { %v3277_v28 = vmul.f32 2.0, %v1472_v58  ;;  %v2407_v32 = vpop.f32.mrb[53].mxu1 }
 0x33c   : > { %v1475_v44 = vpop.f32.mrb[54].mxu1 }
 0x33d   : > { %v2408_v13 = vpop.f32.mrb[55].mxu1  ;;  %v1631_v36 = vsel %vm1591_vm2, %v3277_v28, -inf }
 0x33e   : > { %1632 = vmax.xlane.f32.xlu1 %v1631_v36 }
 0x342   : > { %v1512_v11 = vpop.f32.mrb[56].mxu1 }
 0x343   : > { %v3281_v38 = vmul.f32 2.0, %v1512_v11  ;;  %v2413_v34 = vpop.f32.mrb[57].mxu1 }
 0x344   : > { %v1515_v40 = vpop.f32.mrb[58].mxu1 }
 0x345   : > { %v2414_v63 = vpop.f32.mrb[59].mxu1  ;;  %v1634_v42 = vsel %vm1591_vm2, %v3281_v38, -inf }
 0x346   : > { %1635 = vmax.xlane.f32.xlu1 %v1634_v42 }
 0x34a   : > { %v1552_v43 = vpop.f32.mrb[60].mxu1 }
 0x34b   : > { %v3285_v29 = vmul.f32 2.0, %v1552_v43  ;;  %v2419_v25 = vpop.f32.mrb[61].mxu1 }
 0x34c   : > { %v1555_v45 = vpop.f32.mrb[62].mxu1 }
 0x34d   : > { %v2420_v48 = vpop.f32.mrb[63].mxu1  ;;  %v1637_v46 = vsel %vm1591_vm2, %v3285_v29, -inf }
 0x34e   : > { %1638 = vmax.xlane.f32.xlu1 %v1637_v46 }
 0x352   : > { %1804 = vadd.xlane.f32.xlu1 %v1803_v47 }
 0x356   : > { %1828 = vadd.xlane.f32.xlu1 %v1827_v37 }
 0x363   : > { %v3297_v33 = vpop.xlane.xlu0 %1593 }
 0x364   : > { %v1640_v57 = vsub.f32 %v3213_v8, %v3297_v33 }
 0x366   : > { %v1656_v5 = vmul.f32 1.442695, %v1640_v57 }
 0x368   : > { %2582 = vpow2.f32 %v1656_v5 }
 0x36b   : > { %v3301_v61 = vpop.xlane.xlu1 %1596 }
 0x36c   : > { %v1641_v53 = vsub.f32 %v3217_v14, %v3301_v61 }
 0x36e   : > { %v1658_v3 = vmul.f32 1.442695, %v1641_v53 }
 0x370   : > { %2584 = vpow2.f32 %v1658_v3 }
 0x372   : > { %v2583_v24 = vpop.eup %2582 }
 0x373   : > { %v3305_v50 = vpop.xlane.xlu0 %1599  ;;  %v1688_v4 = vsel %vm1591_vm2, %v2583_v24, 0.0 }
 0x374   : > { %v1642_v6 = vsub.f32 %v3221_v55, %v3305_v50  ;;  %1689 = vadd.xlane.f32.xlu0 %v1688_v4 }
 0x376   : > { %v1660_v12 = vmul.f32 1.442695, %v1642_v6 }
 0x378   : > { %2586 = vpow2.f32 %v1660_v12 }
 0x37a   : > { %v2585_v8 = vpop.eup %2584 }
 0x37b   : > { %v3310_v7 = vpop.xlane.xlu0 %1602  ;;  %v1691_v39 = vsel %vm1591_vm2, %v2585_v8, 0.0  ;;  %v1786_v8 = vsel %vm3249_vm3, %v3221_v55, 0.0 }
 0x37c   : > { %v1643_v14 = vsub.f32 %v3225_v19, %v3310_v7  ;;  %1692 = vadd.xlane.f32.xlu1 %v1691_v39 }
 0x37e   : > { %v1662_v2 = vmul.f32 1.442695, %v1643_v14 }
 0x380   : > { %2588 = vpow2.f32 %v1662_v2  ;;  %1831 = vadd.xlane.f32.xlu1 %v1830_v62  ;;  %v1806_v2 = vsel %vm1591_vm2, %v1786_v8, 0.0  ;;  %v1787_v62 = vsel %vm3249_vm3, %v3225_v19, 0.0 }
 0x381   : > { %v1809_v55 = vsel %vm1591_vm2, %v1787_v62, 0.0 }
 0x382   : > { %v2587_v31 = vpop.eup %2586 }
 0x383   : > { %v3322_v27 = vpop.xlane.xlu0 %1605  ;;  %v1694_v10 = vsel %vm1591_vm2, %v2587_v31, 0.0  ;;  %v1788_v31 = vsel %vm3249_vm3, %v3229_v30, 0.0 }
 0x384   : > { %v1644_v16 = vsub.f32 %v3229_v30, %v3322_v27  ;;  %1834 = vadd.xlane.f32.xlu1 %v1833_v18  ;;  %1695 = vadd.xlane.f32.xlu0 %v1694_v10  ;;  %v1812_v19 = vsel %vm1591_vm2, %v1788_v31, 0.0 }
 0x386   : > { %v1664_v20 = vmul.f32 1.442695, %v1644_v16 }
 0x388   : > { %2590 = vpow2.f32 %v1664_v20 }
 0x38a   : > { %v2589_v41 = vpop.eup %2588 }
 0x38b   : > { %v3328_v1 = vpop.xlane.xlu0 %1608  ;;  %v1697_v23 = vsel %vm1591_vm2, %v2589_v41, 0.0  ;;  %v1789_v41 = vsel %vm3249_vm3, %v3233_v35, 0.0 }
 0x38c   : > { %v1645_v26 = vsub.f32 %v3233_v35, %v3328_v1  ;;  %1698 = vadd.xlane.f32.xlu0 %v1697_v23  ;;  %v1815_v30 = vsel %vm1591_vm2, %v1789_v41, 0.0 }
 0x38e   : > { %v1666_v22 = vmul.f32 1.442695, %v1645_v26  ;;  %v1790_v26 = vsel %vm3249_vm3, %v3239_v54, 0.0 }
 0x38f   : > { %v1818_v35 = vsel %vm1591_vm2, %v1790_v26, 0.0 }
 0x390   : > { %2592 = vpow2.f32 %v1666_v22 }
 0x392   : > { %v2591_v58 = vpop.eup %2590 }
 0x393   : > { %v1700_v32 = vsel %vm1591_vm2, %v2591_v58, 0.0 }
 0x394   : > { %1701 = vadd.xlane.f32.xlu0 %v1700_v32 }
 0x39a   : > { %v2593_v44 = vpop.eup %2592 }
 0x39b   : > { %v1703_v13 = vsel %vm1591_vm2, %v2593_v44, 0.0 }
 0x39c   : > { %1704 = vadd.xlane.f32.xlu0 %v1703_v13  ;;  %v1791_v13 = vsel %vm3249_vm3, %v3243_v59, 0.0 }
 0x3a3   : > { %v3335_v36 = vpop.xlane.xlu0 %1617 }
 0x3a4   : > { %v1648_v63 = vsub.f32 %v3237_v17, %v3335_v36 }
 0x3a6   : > { %v1672_v51 = vmul.f32 1.442695, %v1648_v63 }
 0x3a7   : > { %v3337_v11 = vpop.xlane.xlu0 %1611 }
 0x3a8   : > { %v1646_v34 = vsub.f32 %v3239_v54, %v3337_v11  ;;  %v1821_v54 = vsel %vm1591_vm2, %v1791_v13, 0.0 }
 0x3aa   : > { %v1668_v40 = vmul.f32 1.442695, %v1646_v34 }
 0x3ab   : > { %v3343_v42 = vpop.xlane.xlu1 %1620  ;;  %v3345_v43 = vpop.xlane.xlu0 %1614 }
 0x3ac   : > { %2594 = vpow2.f32 %v1668_v40  ;;  %v1649_v25 = vsub.f32 %v3247_v60, %v3343_v42  ;;  %v1647_v45 = vsub.f32 %v3243_v59, %v3345_v43 }
 0x3ae   : > { %v1674_v48 = vmul.f32 1.442695, %v1649_v25  ;;  %v1670_v46 = vmul.f32 1.442695, %v1647_v45 }
 0x3b0   : > { %2596 = vpow2.f32 %v1674_v48 }
 0x3b1   : > { %2598 = vpow2.f32 %v1670_v46 }
 0x3b2   : > { %2600 = vpow2.f32 %v1672_v51 }
 0x3b3   : > { %v3351_v47 = vpop.xlane.xlu1 %1623 }
 0x3b4   : > { %v1650_v17 = vsub.f32 %v3264_v9, %v3351_v47 }
 0x3b6   : > { %v2595_v56 = vpop.eup %2594  ;;  %v1676_v37 = vmul.f32 1.442695, %v1650_v17 }
 0x3b7   : > { %v1706_v57 = vsel %vm1591_vm2, %v2595_v56, 0.0  ;;  %v1796_v56 = vsel %vm3249_vm3, %v3273_v21, 0.0 }
 0x3b8   : > { %2602 = vpow2.f32 %v1676_v37  ;;  %1707 = vadd.xlane.f32.xlu0 %v1706_v57  ;;  %v1836_v37 = vsel %vm1591_vm2, %v1796_v56, 0.0  ;;  %v1797_v57 = vsel %vm3249_vm3, %v3277_v28, 0.0 }
 0x3ba   : > { %v2597_v60 = vpop.eup %2596 }
 0x3bb   : > { %v2599_v5 = vpop.eup %2598  ;;  %v3356_v53 = vpop.xlane.xlu1 %1626  ;;  %v1715_v3 = vsel %vm1591_vm2, %v2597_v60, 0.0  ;;  %v1839_v60 = vsel %vm1591_vm2, %v1797_v57, 0.0 }
 0x3bc   : > { %v1651_v24 = vsub.f32 %v3269_v15, %v3356_v53  ;;  %1716 = vadd.xlane.f32.xlu1 %v1715_v3  ;;  %v1709_v4 = vsel %vm1591_vm2, %v2599_v5, 0.0  ;;  %v2601_v6 = vpop.eup %2600  ;;  %v1798_v5 = vsel %vm3249_vm3, %v3281_v38, 0.0 }
 0x3bd   : > { %1710 = vadd.xlane.f32.xlu0 %v1709_v4  ;;  %v1712_v12 = vsel %vm1591_vm2, %v2601_v6, 0.0  ;;  %v1842_v3 = vsel %vm1591_vm2, %v1798_v5, 0.0  ;;  %v1802_v4 = vpop.xlane.xlu0 %1801 }
 0x3be   : > { %v1678_v9 = vmul.f32 1.442695, %v1651_v24 }
 0x3c0   : > { %2604 = vpow2.f32 %v1678_v9 }
 0x3c1   : > { %1713 = vadd.xlane.f32.xlu0 %v1712_v12  ;;  %v3425_v6 = vpop.xlane.xlu0 %1825 }
 0x3c2   : > { %v2603_v39 = vpop.eup %2602 }
 0x3c3   : > { %v3366_v14 = vpop.xlane.xlu1 %1629  ;;  %v1718_v52 = vsel %vm1591_vm2, %v2603_v39, 0.0 }
 0x3c4   : > { %v1652_v15 = vsub.f32 %v3273_v21, %v3366_v14  ;;  %1719 = vadd.xlane.f32.xlu1 %v1718_v52  ;;  %v1799_v21 = vsel %vm3249_vm3, %v3285_v29, 0.0 }
 0x3c5   : > { %1807 = vadd.xlane.f32.xlu0 %v1806_v2  ;;  %v1845_v24 = vsel %vm1591_vm2, %v1799_v21, 0.0 }
 0x3c6   : > { %v1680_v49 = vmul.f32 1.442695, %v1652_v15 }
 0x3c8   : > { %2606 = vpow2.f32 %v1680_v49 }
 0x3c9   : > { %1810 = vadd.xlane.f32.xlu0 %v1809_v55 }
 0x3ca   : > { %v2605_v18 = vpop.eup %2604 }
 0x3cb   : > { %v3379_v10 = vpop.xlane.xlu1 %1632  ;;  %v1721_v16 = vsel %vm1591_vm2, %v2605_v18, 0.0 }
 0x3cc   : > { %v1653_v20 = vsub.f32 %v3277_v28, %v3379_v10  ;;  %1722 = vadd.xlane.f32.xlu1 %v1721_v16 }
 0x3cd   : > { %1813 = vadd.xlane.f32.xlu0 %v1812_v19 }
 0x3ce   : > { %v1682_v23 = vmul.f32 1.442695, %v1653_v20 }
 0x3d0   : > { %2608 = vpow2.f32 %v1682_v23 }
 0x3d1   : > { %1816 = vadd.xlane.f32.xlu0 %v1815_v30 }
 0x3d2   : > { %v2607_v22 = vpop.eup %2606 }
 0x3d3   : > { %v3392_v58 = vpop.xlane.xlu1 %1635  ;;  %v1724_v32 = vsel %vm1591_vm2, %v2607_v22, 0.0 }
 0x3d4   : > { %v1654_v44 = vsub.f32 %v3281_v38, %v3392_v58  ;;  %1725 = vadd.xlane.f32.xlu1 %v1724_v32 }
 0x3d5   : > { %1819 = vadd.xlane.f32.xlu0 %v1818_v35 }
 0x3d6   : > { %v1684_v34 = vmul.f32 1.442695, %v1654_v44 }
 0x3d8   : > { %2610 = vpow2.f32 %v1684_v34 }
 0x3d9   : > { %1822 = vadd.xlane.f32.xlu0 %v1821_v54 }
 0x3da   : > { %v2609_v40 = vpop.eup %2608 }
 0x3db   : > { %v3402_v63 = vpop.xlane.xlu1 %1638  ;;  %v1727_v25 = vsel %vm1591_vm2, %v2609_v40, 0.0 }
 0x3dc   : > { %v1655_v45 = vsub.f32 %v3285_v29, %v3402_v63  ;;  %1728 = vadd.xlane.f32.xlu1 %v1727_v25 }
 0x3de   : > { %v1686_v48 = vmul.f32 1.442695, %v1655_v45 }
 0x3df   : > { %v1805_v28 = vpop.xlane.xlu1 %1804 }
 0x3e0   : > { %2612 = vpow2.f32 %v1686_v48 }
 0x3e2   : > { %v2611_v46 = vpop.eup %2610 }
 0x3e3   : > { %v1730_v51 = vsel %vm1591_vm2, %v2611_v46, 0.0  ;;  %v3427_v8 = vpop.xlane.xlu1 %1828 }
 0x3e4   : > { %1731 = vadd.xlane.f32.xlu1 %v1730_v51 }
 0x3ea   : > { %v2613_v59 = vpop.eup %2612 }
 0x3eb   : > { %v1733_v17 = vsel %vm1591_vm2, %v2613_v59, 0.0 }
 0x3ec   : > { %1734 = vadd.xlane.f32.xlu1 %v1733_v17 }
 0x3f0   : > { %1837 = vadd.xlane.f32.xlu1 %v1836_v37 }
 0x3f4   : > { %1840 = vadd.xlane.f32.xlu1 %v1839_v60 }
 0x3f8   : > { %1843 = vadd.xlane.f32.xlu1 %v1842_v3 }
 0x3fc   : > { %1846 = vadd.xlane.f32.xlu1 %v1845_v24 }
 0x401   : > { %v1690_v9 = vpop.xlane.xlu0 %1689 }
 0x402   : > { %2614 = vlog2.f32 %v1690_v9 }
 0x409   : > { %v1693_v38 = vpop.xlane.xlu1 %1692 }
 0x40a   : > { %2616 = vlog2.f32 %v1693_v38 }
 0x40c   : > { %v2615_v29 = vpop.eup %2614 }
 0x40d   : > { %v1737_v55 = vmul.f32 0.6931472, %v2615_v29  ;;  %v3429_v18 = vpop.xlane.xlu1 %1831 }
 0x40f   : > { %v1768_v41 = vadd.f32 %v1737_v55, %v3297_v33 }
 0x411   : > { %v1696_v12 = vpop.xlane.xlu0 %1695  ;;  %v3433_v22 = vpop.xlane.xlu1 %1834  ;;  %v1848_v35 = vsub.f32 %v1768_v41, %v1802_v4 }
 0x412   : > { %2618 = vlog2.f32 %v1696_v12 }
 0x413   : > { %v1864_v48 = vrot.slane %v1848_v35, 4 }
 0x414   : > { %v2617_v2 = vpop.eup %2616 }
 0x415   : > { %v1739_v31 = vmul.f32 0.6931472, %v2617_v2  ;;  %v1865_v60 = vadd.f32 %v1864_v48, %v1848_v35 }
 0x417   : > { %v1769_v23 = vadd.f32 %v1739_v31, %v3301_v61 }
 0x419   : > { %v1699_v39 = vpop.xlane.xlu0 %1698  ;;  %v1849_v13 = vsub.f32 %v1769_v23, %v1805_v28 }
 0x41a   : > { %2620 = vlog2.f32 %v1699_v39  ;;  %v1866_v39 = vrot.slane %v1865_v60, 2 }
 0x41b   : > { %v1870_v61 = vrot.slane %v1849_v13, 4 }
 0x41c   : > { %v2619_v49 = vpop.eup %2618 }
 0x41d   : > { %v1741_v20 = vmul.f32 0.6931472, %v2619_v49  ;;  %v1871_v5 = vadd.f32 %v1870_v61, %v1849_v13 }
 0x41f   : > { %v1770_v32 = vadd.f32 %v1741_v20, %v3305_v50  ;;  %v1872_v38 = vrot.slane %v1871_v5, 2  ;;  %v1867_v20 = vadd.f32 %v1866_v39, %v1865_v60 }
 0x421   : > { %v1702_v52 = vpop.xlane.xlu0 %1701  ;;  %v1873_v31 = vadd.f32 %v1872_v38, %v1871_v5 }
 0x422   : > { %2622 = vlog2.f32 %v1702_v52 }
 0x423   : > { %v1874_v35 = vrot.slane %v1873_v31, 1 }
 0x424   : > { %v2621_v16 = vpop.eup %2620 }
 0x425   : > { %v1743_v30 = vmul.f32 0.6931472, %v2621_v16 }
 0x427   : > { %v1771_v40 = vadd.f32 %v1743_v30, %v3310_v7 }
 0x429   : > { %v1705_v15 = vpop.xlane.xlu0 %1704 }
 0x42a   : > { %2624 = vlog2.f32 %v1705_v15 }
 0x42c   : > { %v2623_v26 = vpop.eup %2622 }
 0x42d   : > { %v1745_v54 = vmul.f32 0.6931472, %v2623_v26 }
 0x42f   : > { %v1772_v17 = vadd.f32 %v1745_v54, %v3322_v27  ;;  %v1868_v54 = vrot.slane %v1867_v20, 1 }
 0x434   : > { %v2625_v33 = vpop.eup %2624 }
 0x435   : > { %v1747_v56 = vmul.f32 0.6931472, %v2625_v33 }
 0x437   : > { %v1773_v9 = vadd.f32 %v1747_v56, %v3328_v1  ;;  %v1875_v56 = vadd.f32 %v1874_v35, %v1873_v31 }
 0x439   : > { %v1961_v39 = vmul.f32 0.125, %v1875_v56 }
 0x445   : > { %v1708_v0 = vpop.xlane.xlu0 %1707 }
 0x446   : > { %2626 = vlog2.f32 %v1708_v0 }
 0x449   : > { %v1717_v25 = vpop.xlane.xlu1 %1716 }
 0x44a   : > { %v1711_v62 = vpop.xlane.xlu0 %1710 }
 0x44b   : > { %2628 = vlog2.f32 %v1711_v62 }
 0x44c   : > { %2630 = vlog2.f32 %v1717_v25 }
 0x44e   : > { %v1714_v19 = vpop.xlane.xlu0 %1713 }
 0x44f   : > { %2632 = vlog2.f32 %v1714_v19 }
 0x450   : > { %v2627_v57 = vpop.eup %2626 }
 0x451   : > { %v1720_v50 = vpop.xlane.xlu1 %1719  ;;  %v1749_v24 = vmul.f32 0.6931472, %v2627_v57 }
 0x452   : > { %v1808_v44 = vpop.xlane.xlu0 %1807  ;;  %2634 = vlog2.f32 %v1720_v50 }
 0x453   : > { %v1850_v34 = vsub.f32 %v1770_v32, %v1808_v44  ;;  %v1774_v49 = vadd.f32 %v1749_v24, %v3337_v11 }
 0x455   : > { %v1876_v51 = vrot.slane %v1850_v34, 4  ;;  %v2629_v27 = vpop.eup %2628 }
 0x456   : > { %v1811_v45 = vpop.xlane.xlu0 %1810  ;;  %v1751_v16 = vmul.f32 0.6931472, %v2629_v27 }
 0x457   : > { %v1851_v46 = vsub.f32 %v1771_v40, %v1811_v45  ;;  %v1877_v21 = vadd.f32 %v1876_v51, %v1850_v34  ;;  %v2631_v34 = vpop.eup %2630 }
 0x458   : > { %v1775_v13 = vadd.f32 %v1751_v16, %v3345_v43  ;;  %v1869_v43 = vadd.f32 %v1868_v54, %v1867_v20 }
 0x459   : > { %v1882_v59 = vrot.slane %v1851_v46, 4  ;;  %v1723_v4 = vpop.xlane.xlu1 %1722  ;;  %v1878_v52 = vrot.slane %v1877_v21, 2  ;;  %v2633_v33 = vpop.eup %2632 }
 0x45a   : > { %v1814_v37 = vpop.xlane.xlu0 %1813  ;;  %2636 = vlog2.f32 %v1723_v4  ;;  %v1753_v57 = vmul.f32 0.6931472, %v2633_v33 }
 0x45b   : > { %v1852_v3 = vsub.f32 %v1772_v17, %v1814_v37  ;;  %v1883_v7 = vadd.f32 %v1882_v59, %v1851_v46  ;;  %v1879_v1 = vadd.f32 %v1878_v52, %v1877_v21  ;;  %v1755_v21 = vmul.f32 0.6931472, %v2631_v34 }
 0x45c   : > { %v2635_v46 = vpop.eup %2634  ;;  %v1960_v52 = vmul.f32 0.125, %v1869_v43 }
 0x45d   : > { %v1888_v28 = vrot.slane %v1852_v3, 4  ;;  %v1884_v29 = vrot.slane %v1883_v7, 2  ;;  %v1880_v40 = vrot.slane %v1879_v1, 1 }
 0x45e   : > { %v1817_v12 = vpop.xlane.xlu0 %1816 }
 0x45f   : > { %v1889_v15 = vadd.f32 %v1888_v28, %v1852_v3  ;;  %v1853_v0 = vsub.f32 %v1773_v9, %v1817_v12  ;;  %v1885_v30 = vadd.f32 %v1884_v29, %v1883_v7  ;;  %v1881_v60 = vadd.f32 %v1880_v40, %v1879_v1 }
 0x460   : > { %v1757_v7 = vmul.f32 0.6931472, %v2635_v46  ;;  %v1993_v1 = vsel %vm1992_vm4, %v1961_v39, %v1960_v52 }
 0x461   : > { %v1890_v2 = vrot.slane %v1889_v15, 2  ;;  %v1894_v62 = vrot.slane %v1853_v0, 4  ;;  %v1726_v11 = vpop.xlane.xlu1 %1725  ;;  %v1886_v48 = vrot.slane %v1885_v30, 1 }
 0x462   : > { %v1820_v55 = vpop.xlane.xlu0 %1819  ;;  %2638 = vlog2.f32 %v1726_v11 }
 0x463   : > { %v1895_v41 = vadd.f32 %v1894_v62, %v1853_v0  ;;  %v1854_v23 = vsub.f32 %v1774_v49, %v1820_v55  ;;  %v1891_v19 = vadd.f32 %v1890_v2, %v1889_v15  ;;  %v1887_v24 = vadd.f32 %v1886_v48, %v1885_v30 }
 0x464   : > { %v2637_v17 = vpop.eup %2636  ;;  %v1776_v15 = vadd.f32 %v1753_v57, %v3335_v36  ;;  %v1962_v0 = vmul.f32 0.125, %v1881_v60  ;;  %v1777_v2 = vadd.f32 %v1755_v21, %v3343_v42  ;;  %v1778_v62 = vadd.f32 %v1757_v7, %v3351_v47 }
 0x465   : > { %v1896_v26 = vrot.slane %v1895_v41, 2  ;;  %v1900_v32 = vrot.slane %v1854_v23, 4  ;;  %v1892_v51 = vrot.slane %v1891_v19, 1  ;;  %v1759_v28 = vmul.f32 0.6931472, %v2637_v17 }
 0x466   : > { %v1823_v44 = vpop.xlane.xlu0 %1822  ;;  %v1963_v49 = vmul.f32 0.125, %v1887_v24  ;;  %v1856_v36 = vsub.f32 %v1776_v15, %v3425_v6  ;;  %v1995_v42 = vsel %vm1994_vm5, %v1962_v0, %v1993_v1 }
 0x467   : > { %v1897_v25 = vadd.f32 %v1896_v26, %v1895_v41  ;;  %v1901_v45 = vadd.f32 %v1900_v32, %v1854_v23  ;;  %v1855_v61 = vsub.f32 %v1775_v13, %v1823_v44  ;;  %v1893_v9 = vadd.f32 %v1892_v51, %v1891_v19 }
 0x468   : > { %v1779_v16 = vadd.f32 %v1759_v28, %v3356_v53  ;;  %v1857_v19 = vsub.f32 %v1777_v2, %v3427_v8  ;;  %v1858_v53 = vsub.f32 %v1778_v62, %v3429_v18  ;;  %v1997_v26 = vsel %vm1996_vm6, %v1963_v49, %v1995_v42 }
 0x469   : > { %v1902_v59 = vrot.slane %v1901_v45, 2  ;;  %v1898_v50 = vrot.slane %v1897_v25, 1  ;;  %v1906_v37 = vrot.slane %v1855_v61, 4  ;;  %v1729_v3 = vpop.xlane.xlu1 %1728  ;;  %v1964_v20 = vmul.f32 0.125, %v1893_v9 }
 0x46a   : > { %2640 = vlog2.f32 %v1729_v3  ;;  %v1859_v44 = vsub.f32 %v1779_v16, %v3433_v22  ;;  %v1912_v34 = vrot.slane %v1856_v36, 4  ;;  %v1918_v11 = vrot.slane %v1857_v19, 4 }
 0x46b   : > { %v1903_v5 = vadd.f32 %v1902_v59, %v1901_v45  ;;  %v1907_v4 = vadd.f32 %v1906_v37, %v1855_v61  ;;  %v1899_v38 = vadd.f32 %v1898_v50, %v1897_v25  ;;  %v1999_v35 = vsel %vm1998_vm7, %v1964_v20, %v1997_v26 }
 0x46c   : > { %v2639_v30 = vpop.eup %2638  ;;  %v1924_v8 = vrot.slane %v1858_v53, 4  ;;  %v1930_v33 = vrot.slane %v1859_v44, 4  ;;  %v1913_v22 = vadd.f32 %v1912_v34, %v1856_v36  ;;  %v1919_v51 = vadd.f32 %v1918_v11, %v1857_v19 }
 0x46d   : > { %v1904_v12 = vrot.slane %v1903_v5, 1  ;;  %v1908_v27 = vrot.slane %v1907_v4, 2  ;;  %v1965_v41 = vmul.f32 0.125, %v1899_v38  ;;  %v1761_v54 = vmul.f32 0.6931472, %v2639_v30 }
 0x46e   : > { %v1925_v59 = vadd.f32 %v1924_v8, %v1858_v53  ;;  %v1931_v56 = vadd.f32 %v1930_v33, %v1859_v44  ;;  %v1914_v37 = vrot.slane %v1913_v22, 2 }
 0x46f   : > { %v1905_v29 = vadd.f32 %v1904_v12, %v1903_v5  ;;  %v1909_v55 = vadd.f32 %v1908_v27, %v1907_v4  ;;  %v2001_v6 = vsel %vm2000_vm8, %v1965_v41, %v1999_v35  ;;  %v1780_v61 = vadd.f32 %v1761_v54, %v3366_v14 }
 0x470   : > { %v1920_v5 = vrot.slane %v1919_v51, 2  ;;  %v1926_v3 = vrot.slane %v1925_v59, 2  ;;  %v1932_v7 = vrot.slane %v1931_v56, 2  ;;  %v1915_v9 = vadd.f32 %v1914_v37, %v1913_v22 }
 0x471   : > { %v1732_v31 = vpop.xlane.xlu1 %1731  ;;  %v1910_v23 = vrot.slane %v1909_v55, 1  ;;  %v1966_v47 = vmul.f32 0.125, %v1905_v29 }
 0x472   : > { %2642 = vlog2.f32 %v1732_v31  ;;  %v1921_v38 = vadd.f32 %v1920_v5, %v1919_v51  ;;  %v1927_v27 = vadd.f32 %v1926_v3, %v1925_v59  ;;  %v1933_v0 = vadd.f32 %v1932_v7, %v1931_v56 }
 0x473   : > { %v1911_v32 = vadd.f32 %v1910_v23, %v1909_v55  ;;  %v2003_v40 = vsel %vm2002_vm9, %v1966_v47, %v2001_v6  ;;  %v1916_v49 = vrot.slane %v1915_v9, 1 }
 0x474   : > { %v2641_v25 = vpop.eup %2640  ;;  %v1922_v16 = vrot.slane %v1921_v38, 1  ;;  %v1928_v20 = vrot.slane %v1927_v27, 1  ;;  %v1934_v41 = vrot.slane %v1933_v0, 1 }
 0x475   : > { %v1967_v13 = vmul.f32 0.125, %v1911_v32  ;;  %v1763_v48 = vmul.f32 0.6931472, %v2641_v25  ;;  %v1917_v47 = vadd.f32 %v1916_v49, %v1915_v9 }
 0x476   : > { %v1929_v26 = vadd.f32 %v1928_v20, %v1927_v27  ;;  %v1923_v32 = vadd.f32 %v1922_v16, %v1921_v38  ;;  %v1935_v44 = vadd.f32 %v1934_v41, %v1933_v0 }
 0x477   : > { %v2005_v18 = vsel %vm2004_vm10, %v1967_v13, %v2003_v40  ;;  %v1781_v60 = vadd.f32 %v1763_v48, %v3379_v10  ;;  %v1968_v13 = vmul.f32 0.125, %v1917_v47 }
 0x478   : > { %2015 = vst [vmem:[%s3457_s25] sm:$0xff] %v2005_v18  ;;  %v1970_v25 = vmul.f32 0.125, %v1929_v26  ;;  %v1969_v11 = vmul.f32 0.125, %v1923_v32  ;;  %v1971_v8 = vmul.f32 0.125, %v1935_v44 }
 0x479   : > { %v1735_v45 = vpop.xlane.xlu1 %1734 }
 0x47a   : > { %2644 = vlog2.f32 %v1735_v45  ;;  %v2006_v22 = vsel %vm1992_vm4, %v1969_v11, %v1968_v13 }
 0x47c   : > { %v2643_v46 = vpop.eup %2642 }
 0x47d   : > { %v1838_v17 = vpop.xlane.xlu1 %1837  ;;  %v1765_v43 = vmul.f32 0.6931472, %v2643_v46  ;;  %v2007_v46 = vsel %vm1994_vm5, %v1970_v25, %v2006_v22 }
 0x47e   : > { %v1860_v50 = vsub.f32 %v1780_v61, %v1838_v17  ;;  %v2008_v59 = vsel %vm1996_vm6, %v1971_v8, %v2007_v46 }
 0x47f   : > { %v1782_v39 = vadd.f32 %v1765_v43, %v3392_v58 }
 0x480   : > { %v1936_v57 = vrot.slane %v1860_v50, 4 }
 0x481   : > { %v1841_v21 = vpop.xlane.xlu1 %1840 }
 0x482   : > { %v1937_v24 = vadd.f32 %v1936_v57, %v1860_v50  ;;  %v1861_v4 = vsub.f32 %v1781_v60, %v1841_v21 }
 0x484   : > { %v2645_v28 = vpop.eup %2644  ;;  %v1938_v14 = vrot.slane %v1937_v24, 2  ;;  %v1942_v12 = vrot.slane %v1861_v4, 4 }
 0x485   : > { %v1767_v52 = vmul.f32 0.6931472, %v2645_v28  ;;  %v1844_v15 = vpop.xlane.xlu1 %1843 }
 0x486   : > { %v1943_v29 = vadd.f32 %v1942_v12, %v1861_v4  ;;  %v1862_v2 = vsub.f32 %v1782_v39, %v1844_v15  ;;  %v1939_v10 = vadd.f32 %v1938_v14, %v1937_v24 }
 0x487   : > { %v1783_v62 = vadd.f32 %v1767_v52, %v3402_v63 }
 0x488   : > { %v1944_v55 = vrot.slane %v1943_v29, 2  ;;  %v1948_v31 = vrot.slane %v1862_v2, 4  ;;  %v1940_v42 = vrot.slane %v1939_v10, 1 }
 0x489   : > { %v1847_v1 = vpop.xlane.xlu1 %1846 }
 0x48a   : > { %v1945_v23 = vadd.f32 %v1944_v55, %v1943_v29  ;;  %v1949_v36 = vadd.f32 %v1948_v31, %v1862_v2  ;;  %v1863_v58 = vsub.f32 %v1783_v62, %v1847_v1  ;;  %v1941_v6 = vadd.f32 %v1940_v42, %v1939_v10 }
 0x48c   : > { %v1946_v30 = vrot.slane %v1945_v23, 1  ;;  %v1950_v19 = vrot.slane %v1949_v36, 2  ;;  %v1954_v53 = vrot.slane %v1863_v58, 4  ;;  %v1972_v33 = vmul.f32 0.125, %v1941_v6 }
 0x48e   : > { %v1951_v35 = vadd.f32 %v1950_v19, %v1949_v36  ;;  %v1955_v63 = vadd.f32 %v1954_v53, %v1863_v58  ;;  %v1947_v34 = vadd.f32 %v1946_v30, %v1945_v23  ;;  %v2009_v56 = vsel %vm1998_vm7, %v1972_v33, %v2008_v59 }
 0x490   : > { %v1952_v54 = vrot.slane %v1951_v35, 1  ;;  %v1956_v40 = vrot.slane %v1955_v63, 2  ;;  %v1973_v48 = vmul.f32 0.125, %v1947_v34 }
 0x492   : > { %v1953_v18 = vadd.f32 %v1952_v54, %v1951_v35  ;;  %v1957_v45 = vadd.f32 %v1956_v40, %v1955_v63  ;;  %v2010_v50 = vsel %vm2000_vm8, %v1973_v48, %v2009_v56 }
 0x494   : > { %v1958_v61 = vrot.slane %v1957_v45, 1  ;;  %v1974_v51 = vmul.f32 0.125, %v1953_v18 }
 0x496   : > { %v1959_v17 = vadd.f32 %v1958_v61, %v1957_v45  ;;  %v2011_v43 = vsel %vm2002_vm9, %v1974_v51, %v2010_v50 }
 0x498   : > { %v1975_v37 = vmul.f32 0.125, %v1959_v17 }
 0x49a   : > { %v2012_v57 = vsel %vm2004_vm10, %v1975_v37, %v2011_v43 }
 0x49b   : > { %2016 = vst [vmem:[%s3457_s25 + $0x8] sm:$0xff] %v2012_v57 }
 0x49c   : > { %2717 = shalt.err (!%p2714_p7)
}
 0x49d   : > { %s2718_s22 = scalar_lea.hbm %s3474_s27, 256  ;;  %s2722_s9 = scalar_lea.hbm %s3525_s3, 1024 }
 0x49e   : > { %p2719_p9 = scmp.ne.s32.totalorder %s3474_s27, %s2718_s22  ;;  %p2723_p5 = scmp.lt.u32.totalorder %s3474_s27, %s3525_s3 }
 0x49f   : > { %p2724_p10 = scmp.lt.u32.totalorder %s2722_s9, %s2718_s22  ;;  %p2726_p1 = scmp.lt.u32.totalorder %s2718_s22, %s3474_s27 }
 0x4a0   : > { %p2720_p11 = pnand %p2719_p9, %p2890_p12 }
 0x4a1   : > { %p2725_p2 = por %p2724_p10, %p2723_p5 }
 0x4a2   : > { %p2721_p0 = pneg %p2720_p11 }
 0x4a3   : > { %p2727_p4 = por %p2726_p1, %p2725_p2 }
 0x4a5   : > { %p2728_p6 = pnand %p2727_p4, %p2721_p0 }
 0x4a7   : > { %2731 = shalt.err (!%p2728_p6)
}
 0x4a8   : > { %s2785_s4 = smov 128   ;;  %s2786_s25 = smov 8  }
 0x4a9   : > { %2427 = dma.vmem_to_hbm [thread:$0]  (%p2890_p12), %s3476_s5, 256, %s3474_s27, %s2018_s16, %s2785_s4, %s2785_s4, %s2786_s25  }
 0x4aa PF: > { %p2444_p8 = scmp.ge.s32.totalorder %s2774_s15, 2  ;;  %s2046_s26 = sand.u32 1, %s2762_s12  }
 0x4ab   : > { %p3542_p13 = scmp.ne.s32.totalorder %s3530_s19, 0  ;;  %s2047_s10 = scalar_lea.sflag [#allocation4], %s2046_s26 }
 0x4ad   : > { %p2438_p3 = pnand %p2444_p8, %p3542_p13 }
 0x4af   : > { %2757 = dma.done.wait (!%p2438_p3), %s2047_s10, 256  }
 0x4b0   : > { %2759 = vsyncadd (!%p2438_p3), %s2047_s10, 4294967040  ;;  %p17_p7 = scmp.ge.s32.totalorder %s2860_s24, 6   ;;  %s3543_s12 = smov %s2766_s13 }
 0x4b1   : > { %s3544_s13 = smov %s2770_s14  ;;  %s3545_s14 = smov %s2886_s17 }
 0x4b2   : > { %s3546_s15 = smov %s2860_s24  ;;  %19 = sbr.rel (!%p17_p7) target bundleno = 6 (0x6), region = 81 }
 0x4b9   :  { %2052 = vsyncpa [#allocation3], 1 }
 0x4ba   :  { %2054 = vsyncpa [#allocation3 + $0x1], 1 }
 0x4bb   :  { %2055 = vsyncpa [#allocation6], 1 }
 0x4bc   :  { %2056 = vsyncpa [#allocation4], 1 }
 0x4bd   :  { %2058 = vsyncpa [#allocation4 + $0x1], 1 }

</bundles_post_ra>
